<compile_context>
chip_gen: v5e
topology: v5e:2x2
jax: 0.10.0
libtpu: 0.0.40
codegen_flags: <defaults>
</compile_context>

<pallas_src>
import functools
import math

import jax
import jax.numpy as jnp
from jax.experimental import pallas as pl
from jax.experimental.pallas import tpu as pltpu


_SQRT1_2 = 0.7071067811865476


def _erf(x):
    # Abramowitz & Stegun 7.1.26, |error| <= 1.5e-7.  Only mul/add/select/exp,
    # so it lowers cleanly on Mosaic and matches torch's exact (erf) GELU.
    a1, a2, a3, a4, a5 = (0.254829592, -0.284496736, 1.421413741,
                          -1.453152027, 1.061405429)
    p = 0.3275911
    sgn = jnp.where(x >= 0.0, 1.0, -1.0)
    ax = jnp.abs(x)
    t = 1.0 / (1.0 + p * ax)
    poly = ((((a5 * t + a4) * t + a3) * t + a2) * t + a1) * t
    return sgn * (1.0 - poly * jnp.exp(-ax * ax))


def _gelu_exact(x):
    return 0.5 * x * (1.0 + _erf(x * _SQRT1_2))


def _make_ffn_kernel(glu):
    def kernel(x_ref, w1_ref, b1_ref, w2_ref, b2_ref, o_ref):
        x = x_ref[...]                                   # [TM, dim] f32
        # First linear: bf16 operands on the MXU, f32 accumulation.
        h = jnp.dot(x.astype(jnp.bfloat16), w1_ref[...],
                    preferred_element_type=jnp.float32) + b1_ref[...]
        if glu:
            inner = h.shape[-1] // 2                     # lane-aligned split
            h = h[:, :inner] * _gelu_exact(h[:, inner:])
        else:
            h = _gelu_exact(h)
        # Dropout(p=0.0)/eval is an identity.  Second linear.
        y = jnp.dot(h.astype(jnp.bfloat16), w2_ref[...],
                    preferred_element_type=jnp.float32) + b2_ref[...]
        o_ref[...] = y.astype(o_ref.dtype)
    return kernel


def feed_forward(x, params, *, glu=False, block_m=128):
    """FeedForward forward pass.

    x:      [..., dim] float32
    params: torch-layout weights:
            w1 [inner*(2 if glu else 1), dim], b1 [inner*(2 if glu else 1)]
            w2 [dim_out, inner],               b2 [dim_out]
    """
    orig_shape = x.shape
    dim = orig_shape[-1]
    x2 = x.reshape(-1, dim).astype(jnp.float32)          # free reshape, no HBM pass
    m = x2.shape[0]

    # Pre-transpose to [in, out] (no in-kernel .T) and cast to bf16 once so
    # every matmul runs at bf16 MXU rate and weight DMA bytes are halved.
    w1 = jnp.asarray(params["w1"]).T.astype(jnp.bfloat16)    # [dim, h1]
    b1 = jnp.asarray(params["b1"]).reshape(1, -1).astype(jnp.float32)
    w2 = jnp.asarray(params["w2"]).T.astype(jnp.bfloat16)    # [inner, dim_out]
    b2 = jnp.asarray(params["b2"]).reshape(1, -1).astype(jnp.float32)
    h1 = w1.shape[1]                    # inner_dim (2*inner_dim when glu=True)
    inner = w2.shape[0]
    dim_out = w2.shape[1]

    # Token tile: multiple of 8 sublanes (or the full extent), padded grid.
    tm = min(block_m, m)
    if tm != m and tm % 8 != 0:
        tm = max(8, (tm // 8) * 8)
    mp = -(-m // tm) * tm
    if mp != m:
        x2 = jnp.pad(x2, ((0, mp - m), (0, 0)))

    out = pl.pallas_call(
        _make_ffn_kernel(glu),
        out_shape=jax.ShapeDtypeStruct((mp, dim_out), jnp.float32),
        grid=(mp // tm,),
        in_specs=[
            pl.BlockSpec((tm, dim), lambda i: (i, 0)),       # x tile
            pl.BlockSpec((dim, h1), lambda i: (0, 0)),       # w1 (bf16)
            pl.BlockSpec((1, h1), lambda i: (0, 0)),         # b1
            pl.BlockSpec((inner, dim_out), lambda i: (0, 0)),  # w2 (bf16)
            pl.BlockSpec((1, dim_out), lambda i: (0, 0)),    # b2
        ],
        out_specs=pl.BlockSpec((tm, dim_out), lambda i: (i, 0)),
        compiler_params=pltpu.CompilerParams(
            dimension_semantics=("parallel",),
            vmem_limit_bytes=32 * 1024 * 1024,
        ),
    )(x2, w1, b1, w2, b2)

    if mp != m:
        out = out[:m]
    return out.reshape(orig_shape[:-1] + (dim_out,))


# ---------------- pure-JAX reference (mirrors the PyTorch forward) -----------
def reference(x, params, glu):
    h = x @ jnp.asarray(params["w1"]).T + jnp.asarray(params["b1"])
    if glu:
        a, gate = jnp.split(h, 2, axis=-1)
        h = a * jax.nn.gelu(gate, approximate=False)      # exact erf GELU (torch default)
    else:
        h = jax.nn.gelu(h, approximate=False)
    return h @ jnp.asarray(params["w2"]).T + jnp.asarray(params["b2"])


if __name__ == "__main__":
    B, N, dim = 2, 128, 64
    mult = 4
    inner = dim * mult
    dim_out = dim

    key = jax.random.PRNGKey(0)
    ks = jax.random.split(key, 10)
    x = jax.random.normal(ks[0], (B, N, dim), jnp.float32)

    # 1) glu=False: Linear(dim, inner) -> GELU -> Linear(inner, dim_out)
    p_gelu = {
        "w1": 0.1 * jax.random.normal(ks[1], (inner, dim), jnp.float32),
        "b1": 0.1 * jax.random.normal(ks[2], (inner,), jnp.float32),
        "w2": 0.1 * jax.random.normal(ks[3], (dim_out, inner), jnp.float32),
        "b2": 0.1 * jax.random.normal(ks[4], (dim_out,), jnp.float32),
    }
    out = jax.block_until_ready(feed_forward(x, p_gelu, glu=False))
    ref = reference(x, p_gelu, False)
    assert out.shape == ref.shape
    assert jnp.allclose(out, ref, atol=2e-2, rtol=2e-2), (
        "mismatch (GELU path): max abs err = %f" % float(jnp.max(jnp.abs(out - ref))))

    # 2) glu=True: GEGLU(dim, inner) -> Linear(inner, dim_out)
    p_geglu = {
        "w1": 0.1 * jax.random.normal(ks[5], (2 * inner, dim), jnp.float32),
        "b1": 0.1 * jax.random.normal(ks[6], (2 * inner,), jnp.float32),
        "w2": 0.1 * jax.random.normal(ks[7], (dim_out, inner), jnp.float32),
        "b2": 0.1 * jax.random.normal(ks[8], (dim_out,), jnp.float32),
    }
    out2 = jax.block_until_ready(feed_forward(x, p_geglu, glu=True))
    ref2 = reference(x, p_geglu, True)
    assert jnp.allclose(out2, ref2, atol=2e-2, rtol=2e-2), (
        "mismatch (GEGLU path): max abs err = %f" % float(jnp.max(jnp.abs(out2 - ref2))))

    # 3) ragged token count (exercises padding path)
    x3 = jax.random.normal(ks[9], (1, 37, dim), jnp.float32)
    out3 = jax.block_until_ready(feed_forward(x3, p_geglu, glu=True))
    ref3 = reference(x3, p_geglu, True)
    assert jnp.allclose(out3, ref3, atol=2e-2, rtol=2e-2), "mismatch (padded path)"

    print("KERNEL_OK")
</pallas_src>

<mosaic_0001>
module attributes {stable_mosaic.version = 11 : i64} {
  func.func @kernel(%arg0: i32, %arg1: memref<128x64xf32, #tpu.memory_space<vmem>>, %arg2: memref<64x256xbf16, #tpu.memory_space<vmem>>, %arg3: memref<1x256xf32, #tpu.memory_space<vmem>>, %arg4: memref<256x64xbf16, #tpu.memory_space<vmem>>, %arg5: memref<1x64xf32, #tpu.memory_space<vmem>>, %arg6: memref<128x64xf32, #tpu.memory_space<vmem>>) attributes {dimension_semantics = [#tpu.dimension_semantics<parallel>], iteration_bounds = array<i64: 2>, scalar_prefetch = 0 : i64, scratch_operands = 0 : i64, tpu.core_type = #tpu.core_type<tc>, window_params = [{transform_indices = @transform_0, window_bounds = array<i64: 128, 64>}, {pipeline_mode = #tpu.pipeline_mode<synchronous>, transform_indices = @transform_1, window_bounds = array<i64: 64, 256>}, {pipeline_mode = #tpu.pipeline_mode<synchronous>, transform_indices = @transform_2, window_bounds = array<i64: 1, 256>}, {pipeline_mode = #tpu.pipeline_mode<synchronous>, transform_indices = @transform_3, window_bounds = array<i64: 256, 64>}, {pipeline_mode = #tpu.pipeline_mode<synchronous>, transform_indices = @transform_4, window_bounds = array<i64: 1, 64>}, {transform_indices = @transform_5, window_bounds = array<i64: 128, 64>}]} {
    %c0 = arith.constant 0 : index
    %c0_0 = arith.constant 0 : index
    %0 = vector.load %arg1[%c0, %c0_0] : memref<128x64xf32, #tpu.memory_space<vmem>>, vector<128x64xf32>
    %1 = arith.truncf %0 : vector<128x64xf32> to vector<128x64xbf16>
    %c0_1 = arith.constant 0 : index
    %c0_2 = arith.constant 0 : index
    %2 = vector.load %arg2[%c0_1, %c0_2] : memref<64x256xbf16, #tpu.memory_space<vmem>>, vector<64x256xbf16>
    %cst = arith.constant dense<0.000000e+00> : vector<128x256xf32>
    %3 = tpu.matmul %1, %2, %cst {dimension_numbers = #tpu.dot_dimension_numbers<[1], [0], [0], [1], [0, 0, 1, 1], [], []>} : vector<128x64xbf16>, vector<64x256xbf16>, vector<128x256xf32> -> vector<128x256xf32>
    %c0_3 = arith.constant 0 : index
    %c0_4 = arith.constant 0 : index
    %4 = vector.load %arg3[%c0_3, %c0_4] : memref<1x256xf32, #tpu.memory_space<vmem>>, vector<1x256xf32>
    %5 = vector.broadcast %4 : vector<1x256xf32> to vector<128x256xf32>
    %6 = arith.addf %3, %5 : vector<128x256xf32>
    %cst_5 = arith.constant 5.000000e-01 : f32
    %7 = vector.broadcast %cst_5 : f32 to vector<128x256xf32>
    %8 = arith.mulf %7, %6 : vector<128x256xf32>
    %cst_6 = arith.constant 0.707106769 : f32
    %9 = vector.broadcast %cst_6 : f32 to vector<128x256xf32>
    %10 = arith.mulf %6, %9 : vector<128x256xf32>
    %cst_7 = arith.constant 0.000000e+00 : f32
    %11 = vector.broadcast %cst_7 : f32 to vector<128x256xf32>
    %12 = arith.cmpf oge, %10, %11 : vector<128x256xf32>
    %cst_8 = arith.constant 1.000000e+00 : f32
    %cst_9 = arith.constant -1.000000e+00 : f32
    %13 = vector.broadcast %cst_8 : f32 to vector<128x256xf32>
    %14 = vector.broadcast %cst_9 : f32 to vector<128x256xf32>
    %15 = arith.select %12, %13, %14 : vector<128x256xi1>, vector<128x256xf32>
    %16 = math.absf %10 : vector<128x256xf32>
    %cst_10 = arith.constant 0.327591091 : f32
    %17 = vector.broadcast %cst_10 : f32 to vector<128x256xf32>
    %18 = arith.mulf %17, %16 : vector<128x256xf32>
    %cst_11 = arith.constant 1.000000e+00 : f32
    %19 = vector.broadcast %cst_11 : f32 to vector<128x256xf32>
    %20 = arith.addf %19, %18 : vector<128x256xf32>
    %cst_12 = arith.constant 1.000000e+00 : f32
    %21 = vector.broadcast %cst_12 : f32 to vector<128x256xf32>
    %22 = arith.divf %21, %20 : vector<128x256xf32>
    %cst_13 = arith.constant 1.06140542 : f32
    %23 = vector.broadcast %cst_13 : f32 to vector<128x256xf32>
    %24 = arith.mulf %23, %22 : vector<128x256xf32>
    %cst_14 = arith.constant -1.45315206 : f32
    %25 = vector.broadcast %cst_14 : f32 to vector<128x256xf32>
    %26 = arith.addf %24, %25 : vector<128x256xf32>
    %27 = arith.mulf %26, %22 : vector<128x256xf32>
    %cst_15 = arith.constant 1.42141378 : f32
    %28 = vector.broadcast %cst_15 : f32 to vector<128x256xf32>
    %29 = arith.addf %27, %28 : vector<128x256xf32>
    %30 = arith.mulf %29, %22 : vector<128x256xf32>
    %cst_16 = arith.constant -0.284496725 : f32
    %31 = vector.broadcast %cst_16 : f32 to vector<128x256xf32>
    %32 = arith.addf %30, %31 : vector<128x256xf32>
    %33 = arith.mulf %32, %22 : vector<128x256xf32>
    %cst_17 = arith.constant 0.254829586 : f32
    %34 = vector.broadcast %cst_17 : f32 to vector<128x256xf32>
    %35 = arith.addf %33, %34 : vector<128x256xf32>
    %36 = arith.mulf %35, %22 : vector<128x256xf32>
    %cst_18 = arith.constant 0.000000e+00 : f32
    %37 = vector.broadcast %cst_18 : f32 to vector<128x256xf32>
    %38 = arith.subf %37, %16 : vector<128x256xf32>
    %39 = arith.mulf %38, %16 : vector<128x256xf32>
    %40 = math.exp %39 : vector<128x256xf32>
    %41 = arith.mulf %36, %40 : vector<128x256xf32>
    %cst_19 = arith.constant 1.000000e+00 : f32
    %42 = vector.broadcast %cst_19 : f32 to vector<128x256xf32>
    %43 = arith.subf %42, %41 : vector<128x256xf32>
    %44 = arith.mulf %15, %43 : vector<128x256xf32>
    %cst_20 = arith.constant 1.000000e+00 : f32
    %45 = vector.broadcast %cst_20 : f32 to vector<128x256xf32>
    %46 = arith.addf %45, %44 : vector<128x256xf32>
    %47 = arith.mulf %8, %46 : vector<128x256xf32>
    %48 = arith.truncf %47 : vector<128x256xf32> to vector<128x256xbf16>
    %c0_21 = arith.constant 0 : index
    %c0_22 = arith.constant 0 : index
    %49 = vector.load %arg4[%c0_21, %c0_22] : memref<256x64xbf16, #tpu.memory_space<vmem>>, vector<256x64xbf16>
    %cst_23 = arith.constant dense<0.000000e+00> : vector<128x64xf32>
    %50 = tpu.matmul %48, %49, %cst_23 {dimension_numbers = #tpu.dot_dimension_numbers<[1], [0], [0], [1], [0, 0, 1, 1], [], []>} : vector<128x256xbf16>, vector<256x64xbf16>, vector<128x64xf32> -> vector<128x64xf32>
    %c0_24 = arith.constant 0 : index
    %c0_25 = arith.constant 0 : index
    %51 = vector.load %arg5[%c0_24, %c0_25] : memref<1x64xf32, #tpu.memory_space<vmem>>, vector<1x64xf32>
    %52 = vector.broadcast %51 : vector<1x64xf32> to vector<128x64xf32>
    %53 = arith.addf %50, %52 : vector<128x64xf32>
    %c0_26 = arith.constant 0 : index
    %c0_27 = arith.constant 0 : index
    %54 = vector.load %arg6[%c0_26, %c0_27] : memref<128x64xf32, #tpu.memory_space<vmem>>, vector<128x64xf32>
    tpu.vector_store %arg6[%c0_26, %c0_27], %53 {strides = array<i32>} : memref<128x64xf32, #tpu.memory_space<vmem>>, vector<128x64xf32>,
    return
  }
  func.func @transform_0(%arg0: i32) -> (i32, i32) {
    %c0_i32 = arith.constant 0 : i32
    %c0_i32_0 = arith.constant 0 : i32
    return %arg0, %c0_i32 : i32, i32
  }
  func.func @transform_1(%arg0: i32) -> (i32, i32) {
    %c0_i32 = arith.constant 0 : i32
    %c0_i32_0 = arith.constant 0 : i32
    %c0_i32_1 = arith.constant 0 : i32
    return %c0_i32, %c0_i32_0 : i32, i32
  }
  func.func @transform_2(%arg0: i32) -> (i32, i32) {
    %c0_i32 = arith.constant 0 : i32
    %c0_i32_0 = arith.constant 0 : i32
    %c0_i32_1 = arith.constant 0 : i32
    return %c0_i32, %c0_i32_0 : i32, i32
  }
  func.func @transform_3(%arg0: i32) -> (i32, i32) {
    %c0_i32 = arith.constant 0 : i32
    %c0_i32_0 = arith.constant 0 : i32
    %c0_i32_1 = arith.constant 0 : i32
    return %c0_i32, %c0_i32_0 : i32, i32
  }
  func.func @transform_4(%arg0: i32) -> (i32, i32) {
    %c0_i32 = arith.constant 0 : i32
    %c0_i32_0 = arith.constant 0 : i32
    %c0_i32_1 = arith.constant 0 : i32
    return %c0_i32, %c0_i32_0 : i32, i32
  }
  func.func @transform_5(%arg0: i32) -> (i32, i32) {
    %c0_i32 = arith.constant 0 : i32
    %c0_i32_0 = arith.constant 0 : i32
    return %arg0, %c0_i32 : i32, i32
  }
}

</mosaic_0001>

<bundles_post_ra>
// kernel: tpu_custom_call.1
= control target key start
LH: loop header
LB: loop body
LE: loop exit
PB: predicated region body
PF: predicated region fallthrough
CT: control target
= control target key end

     0   :  { %s2352_s18 = smov 0   ;;  %s4274_s0 = inlined_call_operand.vmem [shape: f32[256,64], index: 0, kind: input, shape index: {}]   ;;  %s4275_s1 = inlined_call_operand.vmem [shape: bf16[64,256], index: 1, kind: input, shape index: {}]   ;;  %s4276_s2 = inlined_call_operand.vmem [shape: f32[1,256], index: 2, kind: input, shape index: {}]   ;;  %s4277_s3 = inlined_call_operand.vmem [shape: bf16[256,64], index: 3, kind: input, shape index: {}]   ;;  %s4278_s4 = inlined_call_operand.vmem [shape: f32[1,64], index: 4, kind: input, shape index: {}]   ;;  %s4279_s5 = inlined_call_operand.vmem [shape: f32[256,64], index: 5, kind: output, shape index: {}]  }
   0x1 LB: > { %s2028_s19 = sadd.s32 4294967295, %s2319_s18   ;;  %p2032_p0 = scmp.ge.s32.totalorder %s2319_s18, 1  ;;  %s2319_s18 = sphi %s2352_s18, %s15_s18  }
   0x2   : > { %p188_p1 = scmp.lt.s32.totalorder %s2319_s18, 3 }
   0x4   : > { %p189_p2 = pnand %p2032_p0, %p188_p1 }
   0x6   : > { %192 = sbr.rel (%p189_p2) target bundleno = 637 (0x27d), region = 40 }
   0xb   : > { %v2063_v0 = vld [vmem:[%s4275_s1 + $0x30] sm:$0xf]  ;;  %v2158_v1 = vld [vmem:[%s4275_s1 + $0x34] sm:$0xf0]  ;;  %v2157_v2 = vld [vmem:[%s4275_s1 + $0x34] sm:$0xf] }
   0xc   : > { %v2064_v3 = vor.u32 %v2158_v1, %v2063_v0  ;;  %v2065_v4 = vld [vmem:[%s4275_s1 + $0x38] sm:$0xf0]  ;;  %v2055_v5 = vld [vmem:[%s4275_s1 + $0x20] sm:$0xf]  ;;  %v2156_v6 = vld [vmem:[%s4275_s1 + $0x24] sm:$0xf0] }
   0xd   : > { %v2068_v7 = vor.u32 %v2157_v2, %v2065_v4  ;;  %v2155_v8 = vld [vmem:[%s4275_s1 + $0x24] sm:$0xf]  ;;  %v2057_v9 = vld [vmem:[%s4275_s1 + $0x28] sm:$0xf0]  ;;  %v2056_v10 = vor.u32 %v2156_v6, %v2055_v5  ;;  %v2047_v12 = vld [vmem:[%s4275_s1 + $0x10] sm:$0xf] }
   0xe   : > { %336 = vmatpush.bf16.msra.mxu0 %v2064_v3  ;;  %v2060_v11 = vor.u32 %v2155_v8, %v2057_v9  ;;  %v2154_v13 = vld [vmem:[%s4275_s1 + $0x14] sm:$0xf0]  ;;  %v2153_v14 = vld [vmem:[%s4275_s1 + $0x14] sm:$0xf]  ;;  %v2049_v15 = vld [vmem:[%s4275_s1 + $0x18] sm:$0xf0] }
   0xf   : > { %385 = vmatpush.bf16.msra.mxu1 %v2068_v7  ;;  %s2033_s21 = sshll.u32 %s2028_s19, 4  ;;  %v2048_v16 = vor.u32 %v2154_v13, %v2047_v12  ;;  %v2052_v17 = vor.u32 %v2153_v14, %v2049_v15  ;;  %v2039_v18 = vld [vmem:[%s4275_s1] sm:$0xf]  ;;  %v2152_v19 = vld [vmem:[%s4275_s1 + $0x4] sm:$0xf0]  ;;  %vm307_vm0 = vcmask 523264  }
  0x10   : > { %p217_p3 = scmp.lt.s32.totalorder %s2033_s21, 31  ;;  %v2151_v20 = vld [vmem:[%s4275_s1 + $0x4] sm:$0xf]  ;;  %v2041_v21 = vld [vmem:[%s4275_s1 + $0x8] sm:$0xf0]  ;;  %v2040_v22 = vor.u32 %v2152_v19, %v2039_v18  ;;  %v2166_v57 = vld [vmem:[%s4277_s3 + $0x38] sm:$0xff] }
  0x11   : > { %v2044_v23 = vor.u32 %v2151_v20, %v2041_v21  ;;  %v261_v48 = vld [vmem:[%s4276_s2] sm:$0x3]  ;;  %v2174_v58 = vld [vmem:[%s4277_s3 + $0x78] sm:$0xff]  ;;  %1858 = vmatpush.bf16.msra.mxu2 %v2166_v57  ;;  %v2165_v0 = vld [vmem:[%s4277_s3 + $0x30] sm:$0xff] }
  0x12   : > { %337 = vmatpush.bf16.msra.mxu0 %v2056_v10  ;;  %s4604_s21 = smov (!%p217_p3, %s2033_s21), 31  ;;  %v2453_v49 = vperm.slane %v261_v48, 0  ;;  %v2455_v50 = vperm.slane %v261_v48, 1  ;;  %1907 = vmatpush.bf16.msra.mxu3 %v2174_v58  ;;  %v2173_v1 = vld [vmem:[%s4277_s3 + $0x70] sm:$0xff]  ;;  %v2172_v12 = vld [vmem:[%s4277_s3 + $0x68] sm:$0xff]  ;;  %v2163_v19 = vld [vmem:[%s4277_s3 + $0x20] sm:$0xff] }
  0x13   : > { %386 = vmatpush.bf16.msra.mxu1 %v2060_v11  ;;  %s2034_s29 = sshll.u32 %s4604_s21, 3  ;;  %v2164_v11 = vld [vmem:[%s4277_s3 + $0x28] sm:$0xff]  ;;  %v2171_v20 = vld [vmem:[%s4277_s3 + $0x60] sm:$0xff]  ;;  %v2169_v48 = vld [vmem:[%s4277_s3 + $0x50] sm:$0xff] }
  0x14   : > { %s2416_s7 = scalar_lea.vmem %s4274_s0, %s2034_s29  ;;  %s4200_s27 = scalar_lea.vmem %s4279_s5, %s2034_s29 }
  0x15   : > { %v229_v24 = vld [vmem:[%s2416_s7] sm:$0xff]  ;;  %v230_v25 = vld [vmem:[%s2416_s7 + $0x8] sm:$0xff]  ;;  %v231_v27 = vld [vmem:[%s2416_s7 + $0x10] sm:$0xff]  ;;  %1859 = vmatpush.bf16.msra.mxu2 %v2165_v0 }
  0x16   : > { %338 = vmatpush.bf16.msra.mxu0 %v2048_v16  ;;  %v245_v26 = vpack.c.bf16 %v230_v25, %v229_v24  ;;  %v232_v28 = vld [vmem:[%s2416_s7 + $0x18] sm:$0xff]  ;;  %v233_v30 = vld [vmem:[%s2416_s7 + $0x20] sm:$0xff]  ;;  %v234_v31 = vld [vmem:[%s2416_s7 + $0x28] sm:$0xff]  ;;  %1908 = vmatpush.bf16.msra.mxu3 %v2173_v1 }
  0x17   : > { %387 = vmatpush.bf16.msra.mxu1 %v2052_v17  ;;  %v246_v29 = vpack.c.bf16 %v232_v28, %v231_v27  ;;  %v247_v32 = vpack.c.bf16 %v234_v31, %v233_v30  ;;  %v235_v33 = vld [vmem:[%s2416_s7 + $0x30] sm:$0xff]  ;;  %v236_v34 = vld [vmem:[%s2416_s7 + $0x38] sm:$0xff]  ;;  %v237_v36 = vld [vmem:[%s2416_s7 + $0x40] sm:$0xff] }
  0x18   : > { %v248_v35 = vpack.c.bf16 %v236_v34, %v235_v33  ;;  %v238_v37 = vld [vmem:[%s2416_s7 + $0x48] sm:$0xff]  ;;  %v239_v39 = vld [vmem:[%s2416_s7 + $0x50] sm:$0xff]  ;;  %v240_v40 = vld [vmem:[%s2416_s7 + $0x58] sm:$0xff] }
  0x19   : > { %v249_v38 = vpack.c.bf16 %v238_v37, %v237_v36  ;;  %v250_v41 = vpack.c.bf16 %v240_v40, %v239_v39  ;;  %v241_v42 = vld [vmem:[%s2416_s7 + $0x60] sm:$0xff]  ;;  %v242_v43 = vld [vmem:[%s2416_s7 + $0x68] sm:$0xff]  ;;  %v243_v45 = vld [vmem:[%s2416_s7 + $0x70] sm:$0xff]  ;;  %1860 = vmatpush.bf16.msra.mxu2 %v2164_v11 }
  0x1a   : > { %339 = vmatpush.bf16.msra.mxu0 %v2040_v22  ;;  %v251_v44 = vpack.c.bf16 %v242_v43, %v241_v42  ;;  %v244_v46 = vld [vmem:[%s2416_s7 + $0x78] sm:$0xff]  ;;  %1909 = vmatpush.bf16.msra.mxu3 %v2172_v12 }
  0x1b   : > { %388 = vmatpush.bf16.msra.mxu1 %v2044_v23  ;;  %v252_v47 = vpack.c.bf16 %v244_v46, %v243_v45  ;;  %v2170_v30 = vld [vmem:[%s4277_s3 + $0x58] sm:$0xff] }
  0x1d   : > { %2069 = vmatmul.msk.bf16.vlgmr.msra.gmra.mxu0 %vm307_vm0, %v245_v26  ;;  %1861 = vmatpush.bf16.msra.mxu2 %v2163_v19 }
  0x1e   : > { %2077 = vmatmul.msk.bf16.vlgmr.msra.gmra.mxu1 %vm307_vm0, %v245_v26  ;;  %1910 = vmatpush.bf16.msra.mxu3 %v2171_v20 }
  0x22   : > { %1911 = vmatpush.bf16.msra.mxu3 %v2170_v30 }
  0x26   : > { %1912 = vmatpush.bf16.msra.mxu3 %v2169_v48 }
  0x2d   : > { %2070 = vmatmul.msk.bf16.gmra.mxu0 %vm307_vm0, %v246_v29 }
  0x2e   : > { %2078 = vmatmul.msk.bf16.gmra.mxu1 %vm307_vm0, %v246_v29  ;;  %v2162_v29 = vld [vmem:[%s4277_s3 + $0x18] sm:$0xff] }
  0x2f   : > { %1862 = vmatpush.bf16.msra.mxu2 %v2162_v29 }
  0x3d   : > { %2071 = vmatmul.msk.bf16.gmra.mxu0 %vm307_vm0, %v247_v32 }
  0x3e   : > { %2079 = vmatmul.msk.bf16.gmra.mxu1 %vm307_vm0, %v247_v32 }
  0x4d   : > { %2072 = vmatmul.msk.bf16.gmra.mxu0 %vm307_vm0, %v248_v35 }
  0x4e   : > { %2080 = vmatmul.msk.bf16.gmra.mxu1 %vm307_vm0, %v248_v35  ;;  %v4280_v35 = vmov -1.0  }
  0x5d   : > { %2073 = vmatmul.msk.bf16.gmra.mxu0 %vm307_vm0, %v249_v38 }
  0x5e   : > { %2081 = vmatmul.msk.bf16.gmra.mxu1 %vm307_vm0, %v249_v38 }
  0x6d   : > { %2074 = vmatmul.msk.bf16.gmra.mxu0 %vm307_vm0, %v250_v41 }
  0x6e   : > { %2082 = vmatmul.msk.bf16.gmra.mxu1 %vm307_vm0, %v250_v41 }
  0x7d   : > { %2075 = vmatmul.msk.bf16.gmra.mxu0 %vm307_vm0, %v251_v44 }
  0x7e   : > { %2083 = vmatmul.msk.bf16.gmra.mxu1 %vm307_vm0, %v251_v44 }
  0x8d   : > { %2076 = vmatmul.msk.bf16.gmra.mxu0 %vm307_vm0, %v252_v47 }
  0x8e   : > { %2084 = vmatmul.msk.bf16.gmra.mxu1 %vm307_vm0, %v252_v47  ;;  %v2161_v47 = vld [vmem:[%s4277_s3 + $0x10] sm:$0xff] }
  0x8f   : > { %1863 = vmatpush.bf16.msra.mxu2 %v2161_v47 }
  0x9a   : > { %v341_v51 = vpop.f32.mrf.mxu0 }
  0x9b   : > { %v342_v52 = vadd.f32 %v341_v51, %v2453_v49  ;;  %v390_v53 = vpop.f32.mrf.mxu1 }
  0x9c   : > { %v391_v54 = vadd.f32 %v390_v53, %v2455_v50 }
  0x9d   : > { %v462_v55 = vmul.f32 0.70710677, %v342_v52  ;;  %v2515_v31 = vmul.f32 0.5, %v342_v52 }
  0x9e   : > { %v463_v56 = vmul.f32 0.70710677, %v391_v54  ;;  %v2517_v32 = vmul.f32 0.5, %v391_v54 }
  0x9f   : > { %v558_v60 = vand.u32 2147483647, %v462_v55  ;;  %vm494_vm1 = vcmp.ge.f32.partialorder %v462_v55, 0.0 }
  0xa0   : > { %v559_v62 = vand.u32 2147483647, %v463_v56  ;;  %vm495_vm2 = vcmp.ge.f32.partialorder %v463_v56, 0.0  ;;  %4326 = vst [vmem:[#allocation2_spill] sm:$0xff] %v2517_v32  ;;  %v2525_v36 = vsel %vm494_vm1, 1.0, %v4280_v35 }
  0xa1   : > { %v590_v3 = vmul.f32 0.3275911, %v558_v60  ;;  %v1422_v9 = vsub.f32 0.0, %v558_v60  ;;  %v2528_v37 = vsel %vm495_vm2, 1.0, %v4280_v35 }
  0xa2   : > { %v343_v59 = vpop.f32.mrf.mxu0  ;;  %v591_v4 = vmul.f32 0.3275911, %v559_v62  ;;  %v1423_v17 = vsub.f32 0.0, %v559_v62 }
  0xa3   : > { %v392_v61 = vpop.f32.mrf.mxu1  ;;  %v344_v63 = vadd.f32 %v343_v59, %v2453_v49  ;;  %v2480_v8 = vadd.f32 1.0, %v590_v3  ;;  %v1454_v16 = vmul.f32 %v1422_v9, %v558_v60 }
  0xa4   : > { %v2473_v2 = vadd.f32 %v392_v61, %v2455_v50  ;;  %v2488_v13 = vadd.f32 1.0, %v591_v4  ;;  %v1455_v26 = vmul.f32 %v1423_v17, %v559_v62 }
  0xa5   : > { %v2475_v5 = vmul.f32 0.70710677, %v344_v63  ;;  %2185 = vrcp.f32 %v2480_v8  ;;  %v1486_v25 = vmul.f32 1.442695, %v1454_v16  ;;  %v2534_v41 = vmul.f32 0.5, %v344_v63 }
  0xa6   : > { %v2478_v6 = vmul.f32 0.70710677, %v2473_v2  ;;  %2187 = vrcp.f32 %v2488_v13  ;;  %v1488_v45 = vmul.f32 1.442695, %v1455_v26  ;;  %v2560_v56 = vmul.f32 0.5, %v2473_v2 }
  0xa7   : > { %v560_v14 = vand.u32 2147483647, %v2475_v5  ;;  %2189 = vpow2.f32 %v1486_v25  ;;  %vm496_vm3 = vcmp.ge.f32.partialorder %v2475_v5, 0.0  ;;  %v665_v0 = vand.u32 2147483648, %v2480_v8 }
  0xa8   : > { %v561_v15 = vand.u32 2147483647, %v2478_v6  ;;  %vm497_vm4 = vcmp.ge.f32.partialorder %v2478_v6, 0.0  ;;  %4327 = vst [vmem:[#allocation3_spill] sm:$0xff] %v2560_v56  ;;  %v2567_v60 = vsel %vm496_vm3, 1.0, %v4280_v35  ;;  %vm659_vm6 = vweird.f32 %v2480_v8 }
  0xa9   : > { %v592_v22 = vmul.f32 0.3275911, %v560_v14  ;;  %v1424_v39 = vsub.f32 0.0, %v560_v14  ;;  %v2572_v2 = vsel %vm497_vm4, 1.0, %v4280_v35 }
  0xaa   : > { %v346_v7 = vpop.f32.mrf.mxu0  ;;  %v593_v23 = vmul.f32 0.3275911, %v561_v15  ;;  %v1425_v43 = vsub.f32 0.0, %v561_v15 }
  0xab   : > { %v395_v10 = vpop.f32.mrf.mxu1  ;;  %v2494_v18 = vadd.f32 %v346_v7, %v2453_v49  ;;  %v2522_v34 = vpop.eup %2185  ;;  %v2530_v38 = vadd.f32 1.0, %v592_v22  ;;  %v1456_v55 = vmul.f32 %v1424_v39, %v560_v14  ;;  %v2160_v14 = vld [vmem:[%s4277_s3 + $0x8] sm:$0xff]  ;;  %v2598_v22 = vor.u32 1.1754944e-38, %v665_v0  ;;  %v2159_v39 = vld [vmem:[%s4277_s3] sm:$0xff] }
  0xac   : > { %v2504_v21 = vadd.f32 %v395_v10, %v2455_v50  ;;  %v2532_v40 = vpop.eup %2187  ;;  %v2536_v42 = vadd.f32 1.0, %v593_v23  ;;  %v655_v51 = vmul.f32 %v2522_v34, %v2480_v8  ;;  %v1457_v57 = vmul.f32 %v1425_v43, %v561_v15  ;;  %v2168_v15 = vld [vmem:[%s4277_s3 + $0x48] sm:$0xff]  ;;  %1864 = vmatpush.bf16.msra.mxu2 %v2160_v14  ;;  %v2167_v43 = vld [vmem:[%s4277_s3 + $0x40] sm:$0xff] }
  0xad   : > { %v2507_v27 = vmul.f32 0.70710677, %v2494_v18  ;;  %v670_v54 = vmul.f32 %v2532_v40, %v2488_v13  ;;  %2191 = vrcp.f32 %v2530_v38  ;;  %v2577_v5 = vpop.eup %2189  ;;  %v1490_v7 = vmul.f32 1.442695, %v1456_v55  ;;  %1913 = vmatpush.bf16.msra.mxu3 %v2168_v15 }
  0xae   : > { %v2520_v33 = vmul.f32 0.70710677, %v2504_v21  ;;  %2193 = vrcp.f32 %v2536_v42  ;;  %v656_v1 = vsub.f32 1.0, %v655_v51  ;;  %v1492_v11 = vmul.f32 1.442695, %v1457_v57 }
  0xaf   : > { %v562_v46 = vand.u32 2147483647, %v2507_v27  ;;  %v671_v6 = vsub.f32 1.0, %v670_v54  ;;  %2195 = vpow2.f32 %v1488_v45  ;;  %v2594_v17 = vmul.f32 0.5, %v2494_v18 }
  0xb0   : > { %v563_v52 = vand.u32 2147483647, %v2520_v33  ;;  %2197 = vpow2.f32 %v1490_v7  ;;  %v2612_v29 = vmul.f32 0.5, %v2504_v21  ;;  %vm498_vm5 = vcmp.ge.f32.partialorder %v2507_v27, 0.0  ;;  %1865 = vmatpush.bf16.msra.mxu2 %v2159_v39 }
  0xb1   : > { %v594_v61 = vmul.f32 0.3275911, %v562_v46  ;;  %v1426_v9 = vsub.f32 0.0, %v562_v46  ;;  %4328 = vst [vmem:[#allocation4_spill] sm:$0xff] %v2594_v17  ;;  %v2624_v45 = vmul.f32 %v2532_v40, %v671_v6  ;;  %2199 = vpow2.f32 %v1492_v11  ;;  %1914 = vmatpush.bf16.msra.mxu3 %v2167_v43 }
  0xb2   : > { %v348_v24 = vpop.f32.mrf.mxu0  ;;  %v595_v3 = vmul.f32 0.3275911, %v563_v52  ;;  %v1427_v20 = vsub.f32 0.0, %v563_v52  ;;  %4329 = vst [vmem:[#allocation5_spill] sm:$0xff] %v2612_v29  ;;  %vm499_vm7 = vcmp.ge.f32.partialorder %v2520_v33, 0.0  ;;  %vm660_vm8 = vweird.f32 %v2522_v34 }
  0xb3   : > { %v397_v28 = vpop.f32.mrf.mxu1  ;;  %v2539_v44 = vadd.f32 %v348_v24, %v2453_v49  ;;  %v2591_v16 = vpop.eup %2191  ;;  %v2596_v19 = vadd.f32 1.0, %v594_v61  ;;  %v657_v24 = vmul.f32 %v2522_v34, %v656_v1  ;;  %v1458_v18 = vmul.f32 %v1426_v9, %v562_v46  ;;  %vm2718_vm11 = vmor %vm659_vm6, %vm660_vm8 }
  0xb4   : > { %v2553_v53 = vadd.f32 %v397_v28, %v2455_v50  ;;  %v2600_v23 = vpop.eup %2193  ;;  %v2603_v25 = vadd.f32 1.0, %v595_v3  ;;  %v685_v47 = vmul.f32 %v2591_v16, %v2530_v38  ;;  %v1459_v51 = vmul.f32 %v1427_v20, %v563_v52 }
  0xb5   : > { %v2564_v58 = vmul.f32 0.70710677, %v2539_v44  ;;  %v700_v48 = vmul.f32 %v2600_v23, %v2536_v42  ;;  %2201 = vrcp.f32 %v2596_v19  ;;  %v2633_v54 = vpop.eup %2195  ;;  %v1494_v61 = vmul.f32 1.442695, %v1458_v18 }
  0xb6   : > { %v2575_v4 = vmul.f32 0.70710677, %v2553_v53  ;;  %2203 = vrcp.f32 %v2603_v25  ;;  %v2652_v0 = vsel %vm498_vm5, 1.0, %v4280_v35  ;;  %v2658_v6 = vadd.f32 %v2522_v34, %v657_v24  ;;  %v2660_v7 = vpop.eup %2197 }
  0xb7   : > { %v2583_v12 = vand.u32 2147483647, %v2564_v58  ;;  %4330 = vst [vmem:[#allocation6_spill] sm:$0xff] %v2652_v0  ;;  %v686_v9 = vsub.f32 1.0, %v685_v47  ;;  %v701_v11 = vsub.f32 1.0, %v700_v48  ;;  %v2665_v14 = vsel %vm499_vm7, 1.0, %v4280_v35  ;;  %v2667_v27 = vpop.eup %2199 }
  0xb8   : > { %v2606_v26 = vand.u32 2147483647, %v2575_v4  ;;  %4331 = vst [vmem:[#allocation7_spill] sm:$0xff] %v2665_v14  ;;  %v1496_v15 = vmul.f32 1.442695, %v1459_v51  ;;  %v2670_v20 = vmul.f32 0.5, %v2539_v44  ;;  %2205 = vpow2.f32 %v1494_v61 }
  0xb9   : > { %v596_v21 = vmul.f32 0.3275911, %v2583_v12  ;;  %v1428_v3 = vsub.f32 0.0, %v2583_v12  ;;  %vm500_vm9 = vcmp.ge.f32.partialorder %v2564_v58, 0.0  ;;  %v2690_v47 = vmul.f32 0.5, %v2553_v53 }
  0xba   : > { %v351_v59 = vpop.f32.mrf.mxu0  ;;  %v597_v55 = vmul.f32 0.3275911, %v2606_v26  ;;  %4332 = vst [vmem:[#allocation8_spill] sm:$0xff] %v2670_v20  ;;  %v1429_v48 = vsub.f32 0.0, %v2606_v26  ;;  %v2694_v51 = vmul.f32 %v2591_v16, %v686_v9  ;;  %v2697_v58 = vmul.f32 %v2600_v23, %v701_v11 }
  0xbb   : > { %v400_v62 = vpop.f32.mrf.mxu1  ;;  %v2580_v10 = vadd.f32 %v351_v59, %v2453_v49  ;;  %v2654_v1 = vadd.f32 1.0, %v596_v21  ;;  %v2678_v43 = vpop.eup %2201  ;;  %v1460_v44 = vmul.f32 %v1428_v3, %v2583_v12  ;;  %4335 = vst [vmem:[#allocation11_spill] sm:$0xff] %v2690_v47  ;;  %v2703_v12 = vsel %vm500_vm9, 1.0, %v4280_v35 }
  0xbc   : > { %v2609_v28 = vadd.f32 %v400_v62, %v2455_v50  ;;  %v2672_v18 = vadd.f32 1.0, %v597_v55  ;;  %v715_v61 = vmul.f32 %v2678_v43, %v2596_v19  ;;  %4336 = vst [vmem:[#allocation12_spill] sm:$0xff] %v2703_v12  ;;  %vm501_vm10 = vcmp.ge.f32.partialorder %v2575_v4, 0.0 }
  0xbd   : > { %v2615_v30 = vmul.f32 0.70710677, %v2580_v10  ;;  %2207 = vrcp.f32 %v2654_v1  ;;  %v1498_v35 = vmul.f32 1.442695, %v1460_v44  ;;  %v1461_v63 = vmul.f32 %v1429_v48, %v2606_v26 }
  0xbe   : > { %v2640_v57 = vmul.f32 0.70710677, %v2609_v28  ;;  %4333 = vst [vmem:[#allocation9_spill] sm:$0xff] %v2672_v18  ;;  %2209 = vpow2.f32 %v1496_v15  ;;  %v2724_v47 = vmul.f32 0.5, %v2580_v10  ;;  %v4341_v10 = vand.u32 2147483647, %v2480_v8 }
  0xbf   : > { %v2643_v62 = vand.u32 2147483647, %v2615_v30  ;;  %2211 = vrcp.f32 %v2672_v18  ;;  %vm502_vm13 = vcmp.ge.f32.partialorder %v2615_v30, 0.0  ;;  %vm689_vm3 = vweird.f32 %v2530_v38 }
  0xc0   : > { %v567_v24 = vand.u32 2147483647, %v2640_v57  ;;  %4339 = vst [vmem:[#allocation13_spill] sm:$0xff] %v2724_v47  ;;  %vm2741_vm12 = vcmp.eq.f32.partialorder %v4341_v10, 8.507059e+37  ;;  %vm503_vm14 = vcmp.ge.f32.partialorder %v2640_v57, 0.0  ;;  %vm674_vm6 = vweird.f32 %v2488_v13 }
  0xc1   : > { %v598_v33 = vmul.f32 0.3275911, %v2643_v62  ;;  %v1430_v20 = vsub.f32 0.0, %v2643_v62  ;;  %vm690_vm7 = vweird.f32 %v2591_v16 }
  0xc2   : > { %v353_v46 = vpop.f32.mrf.mxu0  ;;  %v599_v53 = vmul.f32 0.3275911, %v567_v24  ;;  %v1431_v8 = vsub.f32 0.0, %v567_v24  ;;  %vm2918_vm9 = vmor %vm689_vm3, %vm690_vm7  ;;  %vm720_vm7 = vweird.f32 %v2678_v43 }
  0xc3   : > { %v402_v59 = vpop.f32.mrf.mxu1  ;;  %v2646_v52 = vadd.f32 %v353_v46, %v2453_v49  ;;  %v2685_v46 = vpop.eup %2203  ;;  %v2709_v9 = vadd.f32 1.0, %v598_v33  ;;  %v662_v33 = vsel %vm2718_vm11, %v2522_v34, %v2658_v6  ;;  %v716_v34 = vsub.f32 1.0, %v715_v61 }
  0xc4   : > { %v2683_v21 = vadd.f32 %v402_v59, %v2455_v50  ;;  %4334 = vst [vmem:[#allocation10_spill] sm:$0xff] %v2685_v46  ;;  %v730_v3 = vmul.f32 %v2685_v46, %v2603_v25  ;;  %v2730_v14 = vpop.eup %2205  ;;  %v4344_v6 = vmov -1.0   ;;  %v2753_v47 = vadd.f32 1.0, %v599_v53 }
  0xc5   : > { %v2676_v39 = vmul.f32 0.70710677, %v2646_v52  ;;  %4340 = vst [vmem:[#allocation14_spill] sm:$0xff] %v2730_v14  ;;  %v2745_v48 = vpop.eup %2207  ;;  %v2750_v15 = vsel %vm501_vm10, 1.0, %v4344_v6  ;;  %2213 = vrcp.f32 %v2709_v9  ;;  %v1500_v61 = vmul.f32 1.442695, %v1461_v63 }
  0xc6   : > { %v2712_v11 = vmul.f32 0.70710677, %v2683_v21  ;;  %4345 = vst [vmem:[#allocation15_spill] sm:$0xff] %v2750_v15  ;;  %v731_v0 = vsub.f32 1.0, %v730_v3  ;;  %2215 = vpow2.f32 %v1498_v35  ;;  %v745_v53 = vmul.f32 %v2745_v48, %v2654_v1 }
  0xc7   : > { %v568_v55 = vand.u32 2147483647, %v2676_v39  ;;  %4346 = vst [vmem:[#allocation16_spill] sm:$0xff] %v2753_v47  ;;  %v1462_v15 = vmul.f32 %v1430_v20, %v2643_v62  ;;  %v2779_v35 = vmul.f32 0.5, %v2609_v28  ;;  %2217 = vrcp.f32 %v2753_v47 }
  0xc8   : > { %v2734_v12 = vand.u32 2147483647, %v2712_v11  ;;  %v2783_v56 = vmul.f32 %v2678_v43, %v716_v34  ;;  %v1463_v62 = vmul.f32 %v1431_v8, %v567_v24  ;;  %v2791_v30 = vmul.f32 %v2685_v46, %v731_v0 }
  0xc9   : > { %v600_v17 = vmul.f32 0.3275911, %v568_v55  ;;  %4350 = vst [vmem:[#allocation20_spill] sm:$0xff] %v2779_v35  ;;  %v1432_v63 = vsub.f32 0.0, %v568_v55  ;;  %2219 = vpow2.f32 %v1500_v61  ;;  %v2796_v28 = vsel %vm503_vm14, 1.0, %v4344_v6 }
  0xca   : > { %v356_v59 = vpop.f32.mrf.mxu0  ;;  %v601_v4 = vmul.f32 0.3275911, %v2734_v12  ;;  %4351 = vst [vmem:[#allocation21_spill] sm:$0xff] %v2796_v28  ;;  %v2807_v0 = vmul.f32 0.5, %v2646_v52  ;;  %vm504_vm15 = vcmp.ge.f32.partialorder %v2676_v39, 0.0  ;;  %vm505_vm1 = vcmp.ge.f32.partialorder %v2712_v11, 0.0 }
  0xcb   : > { %v405_v29 = vpop.f32.mrf.mxu1  ;;  %v2737_v44 = vadd.f32 %v356_v59, %v2453_v49  ;;  %v2755_v59 = vpop.eup %2209  ;;  %v2768_v3 = vadd.f32 1.0, %v600_v17  ;;  %v1464_v61 = vmul.f32 %v1432_v63, %v568_v55  ;;  %v2824_v55 = vmul.f32 0.5, %v2683_v21 }
  0xcc   : > { %4347 = vst [vmem:[#allocation17_spill] sm:$0xff] %v2755_v59  ;;  %v2759_v10 = vadd.f32 %v405_v29, %v2455_v50  ;;  %v2761_v14 = vpop.eup %2211  ;;  %v2776_v29 = vsel %vm502_vm13, 1.0, %v4344_v6  ;;  %v2798_v35 = vadd.f32 1.0, %v601_v4  ;;  %v2815_v4 = vsel %vm2741_vm12, %v2598_v22, %v662_v33 }
  0xcd   : > { %4348 = vst [vmem:[#allocation18_spill] sm:$0xff] %v2768_v3  ;;  %v2771_v59 = vmul.f32 0.70710677, %v2737_v44  ;;  %v760_v17 = vmul.f32 %v2761_v14, %v2672_v18  ;;  %v2800_v34 = vpop.eup %2213  ;;  %v1502_v18 = vmul.f32 1.442695, %v1462_v15  ;;  %2221 = vrcp.f32 %v2768_v3 }
  0xce   : > { %4349 = vst [vmem:[#allocation19_spill] sm:$0xff] %v2776_v29  ;;  %v2788_v20 = vmul.f32 0.70710677, %v2759_v10  ;;  %v746_v29 = vsub.f32 1.0, %v745_v53  ;;  %v2804_v8 = vpop.eup %2215  ;;  %v1504_v15 = vmul.f32 1.442695, %v1463_v62  ;;  %v775_v52 = vmul.f32 %v2800_v34, %v2709_v9 }
  0xcf   : > { %4352 = vst [vmem:[#allocation22_spill] sm:$0xff] %v2798_v35  ;;  %v570_v24 = vand.u32 2147483647, %v2771_v59  ;;  %v761_v53 = vsub.f32 1.0, %v760_v17  ;;  %v2819_v46 = vpop.eup %2217  ;;  %2223 = vrcp.f32 %v2798_v35  ;;  %v2834_v17 = vsel %vm504_vm15, 1.0, %v4344_v6 }
  0xd0   : > { %4353 = vst [vmem:[#allocation23_spill] sm:$0xff] %v2804_v8  ;;  %v571_v28 = vand.u32 2147483647, %v2788_v20  ;;  %v2829_v22 = vmul.f32 %v2745_v48, %v746_v29  ;;  %2225 = vpow2.f32 %v1502_v18  ;;  %v2831_v63 = vpop.eup %2219  ;;  %v1506_v62 = vmul.f32 1.442695, %v1464_v61 }
  0xd1   : > { %4354 = vst [vmem:[#allocation24_spill] sm:$0xff] %v2807_v0  ;;  %v602_v33 = vmul.f32 0.3275911, %v570_v24  ;;  %v1434_v39 = vsub.f32 0.0, %v570_v24  ;;  %v2841_v0 = vmul.f32 %v2761_v14, %v761_v53  ;;  %v790_v18 = vmul.f32 %v2819_v46, %v2753_v47 }
  0xd2   : > { %v358_v32 = vpop.f32.mrf.mxu0  ;;  %4355 = vst [vmem:[#allocation25_spill] sm:$0xff] %v2819_v46  ;;  %2227 = vpow2.f32 %v1504_v15  ;;  %v1435_v29 = vsub.f32 0.0, %v571_v28  ;;  %v776_v8 = vsub.f32 1.0, %v775_v52  ;;  %v2851_v11 = vadd.f32 %v2591_v16, %v2694_v51 }
  0xd3   : > { %v2810_v57 = vadd.f32 %v358_v32, %v2453_v49  ;;  %4356 = vst [vmem:[#allocation26_spill] sm:$0xff] %v2824_v55  ;;  %v1433_v32 = vsub.f32 0.0, %v2734_v12  ;;  %v407_v26 = vpop.f32.mrf.mxu1  ;;  %v2838_v55 = vpop.eup %2221  ;;  %v2854_v61 = vsel %vm505_vm1, 1.0, %v4344_v6  ;;  %vm506_vm2 = vcmp.ge.f32.partialorder %v2771_v59, 0.0 }
  0xd4   : > { %4357 = vst [vmem:[#allocation27_spill] sm:$0xff] %v2831_v63  ;;  %v2857_v53 = vadd.f32 1.0, %v602_v33  ;;  %v1466_v47 = vmul.f32 %v1434_v39, %v570_v24  ;;  %2229 = vpow2.f32 %v1506_v62  ;;  %v791_v51 = vsub.f32 1.0, %v790_v18 }
  0xd5   : > { %4358 = vst [vmem:[#allocation28_spill] sm:$0xff] %v2834_v17  ;;  %v476_v21 = vmul.f32 0.70710677, %v2810_v57  ;;  %v1465_v63 = vmul.f32 %v1433_v32, %v2734_v12  ;;  %v2847_v17 = vmul.f32 0.5, %v2737_v44  ;;  %v2859_v15 = vpop.eup %2223  ;;  %v805_v12 = vmul.f32 %v2838_v55, %v2768_v3 }
  0xd6   : > { %4360 = vst [vmem:[#allocation30_spill] sm:$0xff] %v2854_v61  ;;  %v603_v44 = vmul.f32 0.3275911, %v571_v28  ;;  %vm507_vm4 = vcmp.ge.f32.partialorder %v2788_v20, 0.0  ;;  %v1467_v61 = vmul.f32 %v1435_v29, %v571_v28  ;;  %v408_v33 = vadd.f32 %v407_v26, %v2455_v50 }
  0xd7   : > { %4359 = vst [vmem:[#allocation29_spill] sm:$0xff] %v2847_v17  ;;  %v572_v52 = vand.u32 2147483647, %v476_v21  ;;  %v2863_v17 = vpop.eup %2225  ;;  %v2869_v24 = vmul.f32 %v2800_v34, %v776_v8  ;;  %v1508_v39 = vmul.f32 1.442695, %v1465_v63  ;;  %v2874_v62 = vsel %vm506_vm2, 1.0, %v4344_v6 }
  0xd8   : > { %4361 = vst [vmem:[#allocation31_spill] sm:$0xff] %v2857_v53  ;;  %v2877_v3 = vmul.f32 0.5, %v2759_v10  ;;  %v820_v20 = vmul.f32 %v2859_v15, %v2798_v35  ;;  %2231 = vrcp.f32 %v2857_v53  ;;  %v1510_v28 = vmul.f32 1.442695, %v1466_v47 }
  0xd9   : > { %4362 = vst [vmem:[#allocation32_spill] sm:$0xff] %v2859_v15  ;;  %v806_v26 = vsub.f32 1.0, %v805_v12  ;;  %v2886_v63 = vsel %vm507_vm4, 1.0, %v4344_v6  ;;  %v2888_v59 = vadd.f32 1.0, %v603_v44  ;;  %v604_v18 = vmul.f32 0.3275911, %v572_v52 }
  0xda   : > { %v361_v32 = vpop.f32.mrf.mxu0  ;;  %4363 = vst [vmem:[#allocation33_spill] sm:$0xff] %v2863_v17  ;;  %v2879_v17 = vpop.eup %2227  ;;  %v2891_v10 = vmul.f32 %v2819_v46, %v791_v51  ;;  %v1512_v29 = vmul.f32 1.442695, %v1467_v61  ;;  %2233 = vpow2.f32 %v1508_v39  ;;  %v2896_v47 = vmul.f32 0.5, %v2810_v57 }
  0xdb   : > { %4364 = vst [vmem:[#allocation34_spill] sm:$0xff] %v2874_v62  ;;  %v362_v8 = vadd.f32 %v361_v32, %v2453_v49  ;;  %v477_v62 = vmul.f32 0.70710677, %v408_v33  ;;  %v2893_v35 = vpop.eup %2229  ;;  %vm508_vm5 = vcmp.ge.f32.partialorder %v476_v21, 0.0  ;;  %v2898_v12 = vmul.f32 0.5, %v408_v33 }
  0xdc   : > { %4365 = vst [vmem:[#allocation35_spill] sm:$0xff] %v2877_v3  ;;  %v1436_v3 = vsub.f32 0.0, %v572_v52  ;;  %v821_v44 = vsub.f32 1.0, %v820_v20  ;;  %2235 = vpow2.f32 %v1510_v28  ;;  %v2905_v61 = vmul.f32 %v2838_v55, %v806_v26 }
  0xdd   : > { %4366 = vst [vmem:[#allocation36_spill] sm:$0xff] %v2879_v17  ;;  %v410_v17 = vpop.f32.mrf.mxu1  ;;  %v2901_v32 = vmul.f32 0.70710677, %v362_v8  ;;  %2237 = vrcp.f32 %v2888_v59  ;;  %v2908_v51 = vadd.f32 1.0, %v604_v18  ;;  %v2914_v33 = vsel %vm508_vm5, 1.0, %v4344_v6 }
  0xde   : > { %4367 = vst [vmem:[#allocation37_spill] sm:$0xff] %v2886_v63  ;;  %v411_v57 = vadd.f32 %v410_v17, %v2455_v50  ;;  %v2911_v21 = vpop.eup %2231  ;;  %2239 = vpow2.f32 %v1512_v29  ;;  %v1468_v39 = vmul.f32 %v1436_v3, %v572_v52  ;;  %v573_v20 = vand.u32 2147483647, %v477_v62 }
  0xdf   : > { %4368 = vst [vmem:[#allocation38_spill] sm:$0xff] %v2888_v59  ;;  %vm509_vm8 = vcmp.ge.f32.partialorder %v477_v62, 0.0  ;;  %v693_v26 = vand.u32 2147483647, %v2530_v38  ;;  %v695_v18 = vand.u32 2147483648, %v2530_v38  ;;  %vm704_vm10 = vweird.f32 %v2536_v42 }
  0xe0   : > { %4369 = vst [vmem:[#allocation39_spill] sm:$0xff] %v2891_v10  ;;  %v1134_v17 = vmul.f32 1.0614054, %v2815_v4  ;;  %v2927_v29 = vmul.f32 %v2859_v15, %v821_v44  ;;  %v2929_v3 = vmul.f32 0.5, %v362_v8  ;;  %v2932_v52 = vand.u32 2147483647, %v2901_v32  ;;  %v2938_v63 = vpop.eup %2233 }
  0xe1   : > { %4370 = vst [vmem:[#allocation40_spill] sm:$0xff] %v2893_v35  ;;  %v2942_v38 = vmul.f32 %v2911_v21, %v2857_v53  ;;  %2241 = vrcp.f32 %v2908_v51  ;;  %v2945_v44 = vmul.f32 0.70710677, %v411_v57  ;;  %v696_v8 = vor.u32 1.1754944e-38, %v695_v18 }
  0xe2   : > { %4371 = vst [vmem:[#allocation41_spill] sm:$0xff] %v2896_v47  ;;  %v1514_v47 = vmul.f32 1.442695, %v1468_v39  ;;  %vm694_vm11 = vcmp.eq.f32.partialorder %v693_v26, 8.507059e+37  ;;  %v605_v28 = vmul.f32 0.3275911, %v573_v20  ;;  %v673_v53 = vadd.f32 %v2532_v40, %v2624_v45 }
  0xe3   : > { %4372 = vst [vmem:[#allocation42_spill] sm:$0xff] %v2898_v12  ;;  %v692_v12 = vsel %vm2918_vm9, %v2591_v16, %v2851_v11  ;;  %v1166_v16 = vadd.f32 -1.4531521, %v1134_v17  ;;  %v606_v18 = vmul.f32 0.3275911, %v2932_v52  ;;  %vm675_vm12 = vweird.f32 %v2532_v40 }
  0xe4   : > { %4373 = vst [vmem:[#allocation43_spill] sm:$0xff] %v2908_v51  ;;  %v2955_v35 = vsel %vm694_vm11, %v696_v8, %v692_v12  ;;  %v836_v26 = vsub.f32 1.0, %v2942_v38  ;;  %v2967_v17 = vand.u32 2147483647, %v2945_v44  ;;  %vm2971_vm13 = vmor %vm674_vm6, %vm675_vm12  ;;  %v678_v45 = vand.u32 2147483647, %v2488_v13 }
  0xe5   : > { %4374 = vst [vmem:[#allocation44_spill] sm:$0xff] %v2911_v21  ;;  %v1136_v39 = vmul.f32 1.0614054, %v2955_v35  ;;  %v1198_v62 = vmul.f32 %v1166_v16, %v2815_v4  ;;  %v680_v8 = vand.u32 2147483648, %v2488_v13  ;;  %v677_v16 = vsel %vm2971_vm13, %v2532_v40, %v673_v53 }
  0xe6   : > { %4375 = vst [vmem:[#allocation45_spill] sm:$0xff] %v2914_v33  ;;  %v2951_v33 = vsel %vm509_vm8, 1.0, %v4344_v6  ;;  %v703_v38 = vadd.f32 %v2600_v23, %v2697_v58  ;;  %vm679_vm14 = vcmp.eq.f32.partialorder %v678_v45, 8.507059e+37  ;;  %vm705_vm15 = vweird.f32 %v2600_v23 }
  0xe7   : > { %4378 = vst [vmem:[#allocation46_spill] sm:$0xff] %v2927_v29  ;;  %v2984_v29 = vadd.f32 1.0, %v605_v28  ;;  %v681_v46 = vor.u32 1.1754944e-38, %v680_v8  ;;  %2243 = vpow2.f32 %v1514_v47  ;;  %v2991_v40 = vmul.f32 0.5, %v411_v57  ;;  %vm2998_vm1 = vmor %vm704_vm10, %vm705_vm15  ;;  %v363_v28 = vpop.f32.mrf.mxu0 }
  0xe8   : > { %4379 = vst [vmem:[#allocation47_spill] sm:$0xff] %v2929_v3  ;;  %v2947_v3 = vpop.eup %2235  ;;  %v607_v58 = vmul.f32 0.3275911, %v2967_v17  ;;  %v707_v47 = vsel %vm2998_vm1, %v2600_v23, %v703_v38  ;;  %vm510_vm3 = vcmp.ge.f32.partialorder %v2901_v32, 0.0  ;;  %vm511_vm4 = vcmp.ge.f32.partialorder %v2945_v44, 0.0 }
  0xe9   : > { %4380 = vst [vmem:[#allocation48_spill] sm:$0xff] %v2938_v63  ;;  %v2953_v11 = vpop.eup %2237  ;;  %v1437_v63 = vsub.f32 0.0, %v573_v20  ;;  %v2994_v53 = vsel %vm679_vm14, %v681_v46, %v677_v16  ;;  %2245 = vrcp.f32 %v2984_v29  ;;  %vm719_vm5 = vweird.f32 %v2596_v19 }
  0xea   : > { %4381 = vst [vmem:[#allocation49_spill] sm:$0xff] %v2947_v3  ;;  %v2959_v15 = vpop.eup %2239  ;;  %v850_v57 = vmul.f32 %v2953_v11, %v2888_v59  ;;  %v412_v59 = vpop.f32.mrf.mxu1  ;;  %vm749_vm6 = vweird.f32 %v2654_v1  ;;  %vm3138_vm9 = vmor %vm719_vm5, %vm720_vm7  ;;  %vm734_vm10 = vweird.f32 %v2603_v25  ;;  %vm750_vm13 = vweird.f32 %v2745_v48 }
  0xeb   : > { %4382 = vst [vmem:[#allocation50_spill] sm:$0xff] %v2951_v33  ;;  %v1168_v33 = vadd.f32 -1.4531521, %v1136_v39  ;;  %v2982_v3 = vpop.eup %2241  ;;  %v708_v39 = vand.u32 2147483647, %v2536_v42  ;;  %v1469_v45 = vmul.f32 %v1437_v63, %v573_v20  ;;  %v3023_v20 = vmul.f32 %v2911_v21, %v836_v26  ;;  %vm3172_vm14 = vmor %vm749_vm6, %vm750_vm13 }
  0xec   : > { %4383 = vst [vmem:[#allocation51_spill] sm:$0xff] %v2959_v15  ;;  %v1230_v15 = vadd.f32 1.4214138, %v1198_v62  ;;  %v710_v62 = vand.u32 2147483648, %v2536_v42  ;;  %v1135_v42 = vmul.f32 1.0614054, %v2994_v53  ;;  %v865_v26 = vmul.f32 %v2982_v3, %v2908_v51 }
  0xed   : > { %v1200_v10 = vmul.f32 %v1168_v33, %v2955_v35  ;;  %4386 = vst [vmem:[#allocation52_spill] sm:$0xff] %v2991_v40  ;;  %v3002_v33 = vadd.f32 1.0, %v606_v18  ;;  %vm709_vm2 = vcmp.eq.f32.partialorder %v708_v39, 8.507059e+37  ;;  %v3020_v63 = vpop.eup %2243  ;;  %v1438_v39 = vsub.f32 0.0, %v2932_v52 }
  0xee   : > { %v1262_v13 = vmul.f32 %v1230_v15, %v2815_v4  ;;  %v711_v46 = vor.u32 1.1754944e-38, %v710_v62  ;;  %v1167_v23 = vadd.f32 -1.4531521, %v1135_v42  ;;  %4389 = vst [vmem:[#allocation53_spill] sm:$0xff] %v3020_v63  ;;  %v3036_v40 = vadd.f32 %v363_v28, %v2453_v49 }
  0xef   : > { %v1232_v15 = vadd.f32 1.4214138, %v1200_v10  ;;  %v3014_v10 = vadd.f32 1.0, %v607_v58  ;;  %2247 = vrcp.f32 %v3002_v33  ;;  %v1439_v58 = vsub.f32 0.0, %v2967_v17  ;;  %v3031_v42 = vpop.eup %2245 }
  0xf0   : > { %v1294_v12 = vadd.f32 -0.28449672, %v1262_v13  ;;  %v3016_v16 = vsel %vm709_vm2, %v711_v46, %v707_v47  ;;  %v880_v28 = vmul.f32 %v3031_v42, %v2984_v29 }
  0xf1   : > { %v1264_v8 = vmul.f32 %v1232_v15, %v2955_v35  ;;  %v1137_v62 = vmul.f32 1.0614054, %v3016_v16  ;;  %v1199_v15 = vmul.f32 %v1167_v23, %v2994_v53  ;;  %2249 = vrcp.f32 %v3014_v10 }
  0xf2   : > { %v1326_v18 = vmul.f32 %v1294_v12, %v2815_v4 }
  0xf3   : > { %v1296_v38 = vadd.f32 -0.28449672, %v1264_v8  ;;  %v1169_v46 = vadd.f32 -1.4531521, %v1137_v62  ;;  %v851_v8 = vsub.f32 1.0, %v850_v57  ;;  %v1471_v57 = vmul.f32 %v1439_v58, %v2967_v17 }
  0xf4   : > { %v1358_v13 = vadd.f32 0.2548296, %v1326_v18  ;;  %v1231_v18 = vadd.f32 1.4214138, %v1199_v15 }
  0xf5   : > { %v1328_v12 = vmul.f32 %v1296_v38, %v2955_v35  ;;  %v1201_v38 = vmul.f32 %v1169_v46, %v3016_v16  ;;  %v3044_v51 = vpop.eup %2247  ;;  %v3066_v32 = vmul.f32 %v2953_v11, %v851_v8 }
  0xf6   : > { %v1390_v47 = vmul.f32 %v1358_v13, %v2815_v4  ;;  %v1516_v4 = vmul.f32 1.442695, %v1469_v45  ;;  %v1470_v13 = vmul.f32 %v1438_v39, %v2932_v52  ;;  %v1263_v62 = vmul.f32 %v1231_v18, %v2994_v53 }
  0xf7   : > { %v1360_v23 = vadd.f32 0.2548296, %v1328_v12  ;;  %v1233_v21 = vadd.f32 1.4214138, %v1201_v38  ;;  %v3057_v52 = vsel %vm511_vm4, 1.0, %v4344_v6  ;;  %v866_v39 = vsub.f32 1.0, %v865_v26  ;;  %v3071_v18 = vpop.eup %2249 }
  0xf8   : > { %v1550_v63 = vmul.f32 %v2577_v5, %v1390_v47  ;;  %v3052_v5 = vsel %vm510_vm3, 1.0, %v4344_v6  ;;  %4391 = vst [vmem:[#allocation55_spill] sm:$0xff] %v3057_v52  ;;  %v1295_v17 = vadd.f32 -0.28449672, %v1263_v62  ;;  %v3060_v45 = vmul.f32 0.70710677, %v3036_v40 }
  0xf9   : > { %v1392_v15 = vmul.f32 %v1360_v23, %v2955_v35  ;;  %4390 = vst [vmem:[#allocation54_spill] sm:$0xff] %v3052_v5  ;;  %v895_v47 = vmul.f32 %v3044_v51, %v3002_v33  ;;  %v1518_v44 = vmul.f32 1.442695, %v1470_v13  ;;  %v881_v23 = vsub.f32 1.0, %v880_v28 }
  0xfa   : > { %v1582_v12 = vsub.f32 1.0, %v1550_v63  ;;  %v1265_v63 = vmul.f32 %v1233_v21, %v3016_v16  ;;  %v1327_v46 = vmul.f32 %v1295_v17, %v2994_v53  ;;  %v1520_v38 = vmul.f32 1.442695, %v1471_v57  ;;  %v366_v17 = vpop.f32.mrf.mxu0 }
  0xfb   : > { %v1552_v58 = vmul.f32 %v2660_v7, %v1392_v15  ;;  %2251 = vpow2.f32 %v1516_v4  ;;  %v413_v21 = vadd.f32 %v412_v59, %v2455_v50  ;;  %v3077_v8 = vmul.f32 %v2982_v3, %v866_v39 }
  0xfc   : > { %v1614_v35 = vmul.f32 %v1582_v12, %v2525_v36  ;;  %v1297_v62 = vadd.f32 -0.28449672, %v1265_v63  ;;  %v1359_v7 = vadd.f32 0.2548296, %v1327_v46  ;;  %v576_v36 = vand.u32 2147483647, %v3060_v45  ;;  %v415_v63 = vpop.f32.mrf.mxu1 }
  0xfd   : > { %v1584_v26 = vsub.f32 1.0, %v1552_v58  ;;  %v896_v28 = vsub.f32 1.0, %v895_v47  ;;  %2253 = vpow2.f32 %v1518_v44  ;;  %v910_v4 = vmul.f32 %v3071_v18, %v3014_v10 }
  0xfe   : > { %v1646_v15 = vadd.f32 1.0, %v1614_v35  ;;  %v1329_v12 = vmul.f32 %v1297_v62, %v3016_v16  ;;  %v1391_v57 = vmul.f32 %v1359_v7, %v2994_v53  ;;  %v3085_v59 = vmul.f32 %v3031_v42, %v881_v23 }
  0xff   : > { %v1616_v13 = vmul.f32 %v1584_v26, %v2567_v60  ;;  %2255 = vpow2.f32 %v1520_v38  ;;  %v608_v35 = vmul.f32 0.3275911, %v576_v36  ;;  %v3088_v46 = vmul.f32 0.70710677, %v413_v21 }
 0x100   : > { %v1361_v39 = vadd.f32 0.2548296, %v1329_v12  ;;  %v1551_v60 = vmul.f32 %v2633_v54, %v1391_v57  ;;  %v718_v47 = vadd.f32 %v2678_v43, %v2783_v56  ;;  %v1678_v44 = vmul.f32 %v1646_v15, %v2515_v31 }
 0x101   : > { %v1648_v58 = vadd.f32 1.0, %v1616_v13  ;;  %v3096_v23 = vadd.f32 %v366_v17, %v2453_v49  ;;  %v3098_v38 = vpop.eup %2251  ;;  %v3101_v62 = vmul.f32 %v3044_v51, %v896_v28  ;;  %v911_v54 = vsub.f32 1.0, %v910_v4 }
 0x102   : > { %v1393_v26 = vmul.f32 %v1361_v39, %v3016_v16  ;;  %v1583_v7 = vsub.f32 1.0, %v1551_v60  ;;  %v3104_v13 = vadd.f32 %v415_v63, %v2455_v50  ;;  %v1440_v56 = vsub.f32 0.0, %v576_v36 }
 0x103   : > { %v1680_v53 = vmul.f32 %v1648_v58, %v2534_v41  ;;  %v3109_v16 = vpop.eup %2253  ;;  %vm512_vm8 = vcmp.ge.f32.partialorder %v3060_v45, 0.0  ;;  %v577_v12 = vand.u32 2147483647, %v3088_v46  ;;  %v723_v28 = vand.u32 2147483647, %v2596_v19 }
 0x104   : > { %v1553_v41 = vmul.f32 %v2667_v27, %v1393_v26  ;;  %4392 = vst [vmem:[#allocation56_spill] sm:$0xff] %v3109_v16  ;;  %v1615_v15 = vmul.f32 %v1583_v7, %v2528_v37  ;;  %v3117_v17 = vadd.f32 1.0, %v608_v35  ;;  %v3120_v27 = vmul.f32 0.70710677, %v3096_v23 }
 0x105   : > { %v1710_v31 = vpack.c.bf16 %v1680_v53, %v1678_v44  ;;  %v3115_v4 = vpop.eup %2255  ;;  %v725_v58 = vand.u32 2147483648, %v2596_v19  ;;  %v3124_v39 = vmul.f32 %v3071_v18, %v911_v54  ;;  %v3127_v37 = vmul.f32 0.5, %v3036_v40 }
 0x106   : > { %4393 = vst [vmem:[#allocation57_spill] sm:$0xff] %v3115_v4  ;;  %v1585_v57 = vsub.f32 1.0, %v1553_v41  ;;  %v3129_v63 = vmul.f32 0.5, %v413_v21  ;;  %v3132_v60 = vmul.f32 0.70710677, %v3104_v13  ;;  %v1647_v53 = vadd.f32 1.0, %v1615_v15 }
 0x107   : > { %1866 = vmatmul.bf16.vlgmr.msra.gmra.mxu2 %v1710_v31  ;;  %4394 = vst [vmem:[#allocation58_spill] sm:$0xff] %v3127_v37  ;;  %v1472_v40 = vmul.f32 %v1440_v56, %v576_v36  ;;  %v722_v21 = vsel %vm3138_vm9, %v2678_v43, %v718_v47  ;;  %v3150_v26 = vsel %vm512_vm8, 1.0, %v4344_v6  ;;  %v609_v19 = vmul.f32 0.3275911, %v577_v12  ;;  %v4400_v47 = vld [vmem:[#allocation2_spill] sm:$0xff]  ;;  %v4401_v15 = vld [vmem:[#allocation3_spill] sm:$0xff] }
 0x108   : > { %4395 = vst [vmem:[#allocation59_spill] sm:$0xff] %v3129_v63  ;;  %v1617_v44 = vmul.f32 %v1585_v57, %v2572_v2  ;;  %v1441_v54 = vsub.f32 0.0, %v577_v12  ;;  %v726_v7 = vor.u32 1.1754944e-38, %v725_v58  ;;  %2257 = vrcp.f32 %v3117_v17  ;;  %v4399_v2 = vld [vmem:[#allocation9_spill] sm:$0xff] }
 0x109   : > { %4398 = vst [vmem:[#allocation60_spill] sm:$0xff] %v3150_v26  ;;  %v3154_v41 = vand.u32 2147483647, %v3120_v27  ;;  %vm724_vm11 = vcmp.eq.f32.partialorder %v723_v28, 8.507059e+37  ;;  %vm764_vm12 = vweird.f32 %v4399_v2  ;;  %v3158_v36 = vand.u32 2147483647, %v3132_v60 }
 0x10a   : > { %v1649_v31 = vadd.f32 1.0, %v1617_v44  ;;  %v3160_v43 = vsel %vm724_vm11, %v726_v7, %v722_v21  ;;  %v748_v45 = vadd.f32 %v2745_v48, %v2829_v22  ;;  %v1679_v56 = vmul.f32 %v1647_v53, %v4400_v47 }
 0x10b   : > { %v1522_v58 = vmul.f32 1.442695, %v1472_v40  ;;  %v753_v35 = vand.u32 2147483647, %v2654_v1  ;;  %v3168_v28 = vadd.f32 1.0, %v609_v19  ;;  %v1473_v44 = vmul.f32 %v1441_v54, %v577_v12  ;;  %v4404_v19 = vld [vmem:[#allocation10_spill] sm:$0xff] }
 0x10c   : > { %v1681_v57 = vmul.f32 %v1649_v31, %v4401_v15  ;;  %v755_v22 = vand.u32 2147483648, %v2654_v1  ;;  %v1138_v7 = vmul.f32 1.0614054, %v3160_v43  ;;  %v610_v53 = vmul.f32 0.3275911, %v3154_v41 }
 0x10d   : > { %v752_v40 = vsel %vm3172_vm14, %v2745_v48, %v748_v45  ;;  %v733_v12 = vadd.f32 %v4404_v19, %v2791_v30  ;;  %vm513_vm15 = vcmp.ge.f32.partialorder %v3088_v46, 0.0  ;;  %v611_v54 = vmul.f32 0.3275911, %v3158_v36 }
 0x10e   : > { %v1711_v63 = vpack.c.bf16 %v1681_v57, %v1679_v56  ;;  %v756_v31 = vor.u32 1.1754944e-38, %v755_v22  ;;  %v1170_v47 = vadd.f32 -1.4531521, %v1138_v7  ;;  %v3186_v15 = vpop.eup %2257  ;;  %vm754_vm1 = vcmp.eq.f32.partialorder %v753_v35, 8.507059e+37 }
 0x10f   : > { %vm735_vm2 = vweird.f32 %v4404_v19  ;;  %v738_v1 = vand.u32 2147483647, %v2603_v25  ;;  %v740_v56 = vand.u32 2147483648, %v2603_v25  ;;  %2259 = vrcp.f32 %v3168_v28 }
 0x110   : > { %1915 = vmatmul.bf16.vlgmr.msra.gmra.mxu3 %v1711_v63  ;;  %v3192_v48 = vsel %vm754_vm1, %v756_v31, %v752_v40  ;;  %v1202_v30 = vmul.f32 %v1170_v47, %v3160_v43  ;;  %vm3197_vm3 = vmor %vm734_vm10, %vm735_vm2  ;;  %v763_v63 = vadd.f32 %v2761_v14, %v2841_v0  ;;  %v1524_v57 = vmul.f32 1.442695, %v1473_v44 }
 0x111   : > { %v3203_v35 = vadd.f32 1.0, %v610_v53  ;;  %v1140_v21 = vmul.f32 1.0614054, %v3192_v48  ;;  %v737_v22 = vsel %vm3197_vm3, %v4404_v19, %v733_v12  ;;  %v741_v40 = vor.u32 1.1754944e-38, %v740_v56 }
 0x112   : > { %v1234_v7 = vadd.f32 1.4214138, %v1202_v30  ;;  %vm765_vm4 = vweird.f32 %v2761_v14  ;;  %v768_v25 = vand.u32 2147483647, %v4399_v2  ;;  %v3211_v31 = vadd.f32 1.0, %v611_v54 }
 0x113   : > { %v1172_v47 = vadd.f32 -1.4531521, %v1140_v21  ;;  %vm739_vm5 = vcmp.eq.f32.partialorder %v738_v1, 8.507059e+37  ;;  %vm3215_vm6 = vmor %vm764_vm12, %vm765_vm4  ;;  %v770_v44 = vand.u32 2147483648, %v4399_v2  ;;  %vm514_vm7 = vcmp.ge.f32.partialorder %v3120_v27, 0.0 }
 0x114   : > { %v1266_v53 = vmul.f32 %v1234_v7, %v3160_v43  ;;  %v3222_v19 = vsel %vm739_vm5, %v741_v40, %v737_v22  ;;  %v767_v12 = vsel %vm3215_vm6, %v2761_v14, %v763_v63  ;;  %2261 = vrcp.f32 %v3203_v35 }
 0x115   : > { %v1204_v54 = vmul.f32 %v1172_v47, %v3192_v48  ;;  %v771_v1 = vor.u32 1.1754944e-38, %v770_v44  ;;  %v1139_v56 = vmul.f32 1.0614054, %v3222_v19  ;;  %v3230_v30 = vpop.eup %2259  ;;  %v925_v2 = vmul.f32 %v3186_v15, %v3117_v17 }
 0x116   : > { %v1442_v45 = vsub.f32 0.0, %v3154_v41  ;;  %v1298_v21 = vadd.f32 -0.28449672, %v1266_v53  ;;  %vm769_vm8 = vcmp.eq.f32.partialorder %v768_v25, 8.507059e+37  ;;  %2263 = vrcp.f32 %v3211_v31 }
 0x117   : > { %v1236_v22 = vadd.f32 1.4214138, %v1204_v54  ;;  %v3236_v14 = vsel %vm769_vm8, %v771_v1, %v767_v12  ;;  %v1171_v63 = vadd.f32 -1.4531521, %v1139_v56  ;;  %2265 = vpow2.f32 %v1522_v58  ;;  %v368_v54 = vpop.f32.mrf.mxu0 }
 0x118   : > { %v3241_v7 = vsel %vm513_vm15, 1.0, %v4344_v6  ;;  %v1330_v40 = vmul.f32 %v1298_v21, %v3160_v43  ;;  %v1141_v47 = vmul.f32 1.0614054, %v3236_v14  ;;  %v3246_v0 = vmul.f32 0.5, %v3096_v23 }
 0x119   : > { %4409 = vst [vmem:[#allocation9_spill] sm:$0xff] %v3241_v7  ;;  %v3251_v25 = vsel %vm514_vm7, 1.0, %v4344_v6  ;;  %v1268_v44 = vmul.f32 %v1236_v22, %v3192_v48  ;;  %v1203_v58 = vmul.f32 %v1171_v63, %v3222_v19  ;;  %2267 = vpow2.f32 %v1524_v57 }
 0x11a   : > { %4410 = vst [vmem:[#allocation2_spill] sm:$0xff] %v3246_v0  ;;  %v1443_v46 = vsub.f32 0.0, %v3158_v36  ;;  %v1362_v53 = vadd.f32 0.2548296, %v1330_v40  ;;  %v1173_v12 = vadd.f32 -1.4531521, %v1141_v47  ;;  %v3256_v1 = vpop.eup %2261  ;;  %v1474_v23 = vmul.f32 %v1442_v45, %v3154_v41 }
 0x11b   : > { %4411 = vst [vmem:[#allocation3_spill] sm:$0xff] %v3251_v25  ;;  %v926_v56 = vsub.f32 1.0, %v925_v2  ;;  %v1300_v21 = vadd.f32 -0.28449672, %v1268_v44  ;;  %v1235_v0 = vadd.f32 1.4214138, %v1203_v58  ;;  %v940_v27 = vmul.f32 %v3230_v30, %v3168_v28 }
 0x11c   : > { %v3262_v22 = vmul.f32 0.5, %v3104_v13  ;;  %v1394_v57 = vmul.f32 %v1362_v53, %v3160_v43  ;;  %v1205_v63 = vmul.f32 %v1173_v12, %v3236_v14  ;;  %v3266_v40 = vpop.eup %2263  ;;  %vm515_vm9 = vcmp.ge.f32.partialorder %v3132_v60, 0.0  ;;  %v4415_v44 = vld [vmem:[#allocation14_spill] sm:$0xff] }
 0x11d   : > { %4413 = vst [vmem:[#allocation61_spill] sm:$0xff] %v3266_v40  ;;  %v1332_v2 = vmul.f32 %v1300_v21, %v3192_v48  ;;  %v1267_v41 = vmul.f32 %v1235_v0, %v3222_v19  ;;  %v3272_v45 = vadd.f32 %v368_v54, %v2453_v49  ;;  %v3274_v47 = vpop.eup %2265  ;;  %vm779_vm10 = vweird.f32 %v2709_v9  ;;  %v417_v54 = vpop.f32.mrf.mxu1 }
 0x11e   : > { %4412 = vst [vmem:[#allocation10_spill] sm:$0xff] %v3262_v22  ;;  %v955_v13 = vmul.f32 %v3256_v1, %v3203_v35  ;;  %v1475_v43 = vmul.f32 %v1443_v46, %v3158_v36  ;;  %v1554_v58 = vmul.f32 %v4415_v44, %v1394_v57  ;;  %v1237_v53 = vadd.f32 1.4214138, %v1205_v63 }
 0x11f   : > { %4414 = vst [vmem:[#allocation62_spill] sm:$0xff] %v3274_v47  ;;  %v3282_v12 = vmul.f32 %v3186_v15, %v926_v56  ;;  %v1526_v21 = vmul.f32 1.442695, %v1474_v23  ;;  %v1364_v0 = vadd.f32 0.2548296, %v1332_v2  ;;  %v3284_v25 = vpop.eup %2267  ;;  %v941_v7 = vsub.f32 1.0, %v940_v27  ;;  %v371_v26 = vpop.f32.mrf.mxu0 }
 0x120   : > { %v1299_v22 = vadd.f32 -0.28449672, %v1267_v41  ;;  %4416 = vst [vmem:[#allocation14_spill] sm:$0xff] %v3284_v25  ;;  %v970_v52 = vmul.f32 %v3266_v40, %v3211_v31  ;;  %v1586_v37 = vsub.f32 1.0, %v1554_v58  ;;  %v1269_v4 = vmul.f32 %v1237_v53, %v3236_v14  ;;  %v4418_v41 = vld [vmem:[#allocation23_spill] sm:$0xff]  ;;  %v4419_v58 = vld [vmem:[#allocation6_spill] sm:$0xff] }
 0x121   : > { %v3292_v36 = vsel %vm515_vm9, 1.0, %v4344_v6  ;;  %v1396_v46 = vmul.f32 %v1364_v0, %v3192_v48  ;;  %v484_v23 = vmul.f32 0.70710677, %v3272_v45  ;;  %v956_v57 = vsub.f32 1.0, %v955_v13  ;;  %v4420_v0 = vld [vmem:[#allocation12_spill] sm:$0xff] }
 0x122   : > { %4417 = vst [vmem:[#allocation63_spill] sm:$0xff] %v3292_v36  ;;  %v1331_v56 = vmul.f32 %v1299_v22, %v3222_v19  ;;  %v1528_v63 = vmul.f32 1.442695, %v1475_v43  ;;  %v1301_v27 = vadd.f32 -0.28449672, %v1269_v4  ;;  %v418_v2 = vadd.f32 %v417_v54, %v2455_v50 }
 0x123   : > { %2269 = vpow2.f32 %v1526_v21  ;;  %v1556_v44 = vmul.f32 %v4418_v41, %v1396_v46  ;;  %v1618_v53 = vmul.f32 %v1586_v37, %v4419_v58  ;;  %v971_v60 = vsub.f32 1.0, %v970_v52 }
 0x124   : > { %v1363_v25 = vadd.f32 0.2548296, %v1331_v56  ;;  %v1333_v36 = vmul.f32 %v1301_v27, %v3236_v14  ;;  %v778_v48 = vadd.f32 %v2800_v34, %v2869_v24  ;;  %vm780_vm11 = vweird.f32 %v2800_v34  ;;  %v4421_v24 = vld [vmem:[#allocation17_spill] sm:$0xff] }
 0x125   : > { %v3305_v22 = vmul.f32 %v3230_v30, %v941_v7  ;;  %v1588_v4 = vsub.f32 1.0, %v1556_v44  ;;  %v580_v43 = vand.u32 2147483647, %v484_v23  ;;  %v3309_v21 = vmul.f32 %v3256_v1, %v956_v57  ;;  %vm3320_vm12 = vmor %vm779_vm10, %vm780_vm11  ;;  %v4424_v7 = vld [vmem:[#allocation18_spill] sm:$0xff] }
 0x126   : > { %v1395_v13 = vmul.f32 %v1363_v25, %v3222_v19  ;;  %2271 = vpow2.f32 %v1528_v63  ;;  %v1365_v52 = vadd.f32 0.2548296, %v1333_v36  ;;  %v3311_v37 = vmul.f32 0.70710677, %v418_v2  ;;  %v4429_v19 = vld [vmem:[#allocation8_spill] sm:$0xff] }
 0x127   : > { %v1620_v54 = vmul.f32 %v1588_v4, %v4420_v0  ;;  %v1650_v46 = vadd.f32 1.0, %v1618_v53  ;;  %v3316_v27 = vadd.f32 %v371_v26, %v2453_v49  ;;  %vm809_vm13 = vweird.f32 %v4424_v7  ;;  %v4427_v53 = vld [vmem:[#allocation27_spill] sm:$0xff]  ;;  %v420_v0 = vpop.f32.mrf.mxu1 }
 0x128   : > { %v1555_v56 = vmul.f32 %v4421_v24, %v1395_v13  ;;  %v3326_v25 = vmul.f32 %v3266_v40, %v971_v60  ;;  %v1397_v36 = vmul.f32 %v1365_v52, %v3236_v14  ;;  %v782_v57 = vsel %vm3320_vm12, %v2800_v34, %v778_v48  ;;  %v4428_v52 = vld [vmem:[#allocation4_spill] sm:$0xff]  ;;  %v4430_v48 = vld [vmem:[#allocation7_spill] sm:$0xff] }
 0x129   : > { %v783_v26 = vand.u32 2147483647, %v2709_v9  ;;  %v3333_v63 = vpop.eup %2269  ;;  %v1652_v41 = vadd.f32 1.0, %v1620_v54  ;;  %vm516_vm14 = vcmp.ge.f32.partialorder %v484_v23, 0.0  ;;  %v612_v58 = vmul.f32 0.3275911, %v580_v43 }
 0x12a   : > { %4425 = vst [vmem:[#allocation23_spill] sm:$0xff] %v3326_v25  ;;  %v1587_v44 = vsub.f32 1.0, %v1555_v56  ;;  %v1557_v4 = vmul.f32 %v4427_v53, %v1397_v36  ;;  %v1444_v13 = vsub.f32 0.0, %v580_v43  ;;  %v581_v60 = vand.u32 2147483647, %v3311_v37 }
 0x12b   : > { %4426 = vst [vmem:[#allocation6_spill] sm:$0xff] %v3333_v63  ;;  %v785_v14 = vand.u32 2147483648, %v2709_v9  ;;  %v1682_v24 = vmul.f32 %v1650_v46, %v4428_v52  ;;  %v1684_v34 = vmul.f32 %v1652_v41, %v4429_v19  ;;  %v3342_v63 = vmul.f32 0.70710677, %v3316_v27 }
 0x12c   : > { %v1619_v47 = vmul.f32 %v1587_v44, %v4430_v48  ;;  %v3344_v54 = vpop.eup %2271  ;;  %v1589_v56 = vsub.f32 1.0, %v1557_v4  ;;  %v3347_v36 = vmul.f32 0.5, %v3272_v45  ;;  %v3349_v53 = vmul.f32 0.5, %v418_v2  ;;  %v4437_v4 = vld [vmem:[#allocation15_spill] sm:$0xff]  ;;  %v4438_v48 = vld [vmem:[#allocation16_spill] sm:$0xff] }
 0x12d   : > { %4431 = vst [vmem:[#allocation12_spill] sm:$0xff] %v3344_v54  ;;  %vm3351_vm15 = vcmp.eq.f32.partialorder %v783_v26, 8.507059e+37  ;;  %v1712_v9 = vpack.c.bf16 %v1684_v34, %v1682_v24  ;;  %v3357_v46 = vsel %vm516_vm14, 1.0, %v4344_v6  ;;  %v3359_v41 = vadd.f32 1.0, %v612_v58  ;;  %v4442_v34 = vld [vmem:[#allocation5_spill] sm:$0xff] }
 0x12e   : > { %4432 = vst [vmem:[#allocation17_spill] sm:$0xff] %v3347_v36  ;;  %v3362_v44 = vadd.f32 %v420_v0, %v2455_v50  ;;  %v1621_v52 = vmul.f32 %v1589_v56, %v4437_v4  ;;  %v1651_v45 = vadd.f32 1.0, %v1619_v47  ;;  %v613_v19 = vmul.f32 0.3275911, %v581_v60 }
 0x12f   : > { %4433 = vst [vmem:[#allocation18_spill] sm:$0xff] %v3349_v53  ;;  %v786_v2 = vor.u32 1.1754944e-38, %v785_v14  ;;  %vm794_vm1 = vweird.f32 %v4438_v48  ;;  %1871 = vmatmul.bf16.gmra.mxu2 %v1712_v9  ;;  %v1476_v26 = vmul.f32 %v1444_v13, %v580_v43  ;;  %v1445_v53 = vsub.f32 0.0, %v581_v60  ;;  %v4441_v14 = vld [vmem:[#allocation22_spill] sm:$0xff]  ;;  %v4443_v9 = vld [vmem:[#allocation11_spill] sm:$0xff] }
 0x130   : > { %4436 = vst [vmem:[#allocation27_spill] sm:$0xff] %v3357_v46  ;;  %v3367_v24 = vand.u32 2147483647, %v3342_v63  ;;  %v808_v23 = vadd.f32 %v2838_v55, %v2905_v61  ;;  %v1653_v58 = vadd.f32 1.0, %v1621_v52  ;;  %vm517_vm2 = vcmp.ge.f32.partialorder %v3311_v37, 0.0 }
 0x131   : > { %vm810_vm3 = vweird.f32 %v2838_v55  ;;  %v813_v47 = vand.u32 2147483647, %v4424_v7  ;;  %2273 = vrcp.f32 %v3359_v41  ;;  %v3376_v0 = vmul.f32 0.70710677, %v3362_v44 }
 0x132   : > { %v3380_v43 = vsel %vm3351_vm15, %v786_v2, %v782_v57  ;;  %vm3384_vm4 = vmor %vm809_vm13, %vm810_vm3  ;;  %v815_v13 = vand.u32 2147483648, %v4424_v7  ;;  %vm824_vm5 = vweird.f32 %v4441_v14  ;;  %v1683_v56 = vmul.f32 %v1651_v45, %v4442_v34 }
 0x133   : > { %v1685_v4 = vmul.f32 %v1653_v58, %v4443_v9  ;;  %v3392_v52 = vadd.f32 1.0, %v613_v19  ;;  %v812_v5 = vsel %vm3384_vm4, %v2838_v55, %v808_v23  ;;  %v1530_v57 = vmul.f32 1.442695, %v1476_v26  ;;  %v4446_v55 = vld [vmem:[#allocation39_spill] sm:$0xff]  ;;  %v4447_v26 = vld [vmem:[#allocation25_spill] sm:$0xff] }
 0x134   : > { %v1477_v2 = vmul.f32 %v1445_v53, %v581_v60  ;;  %v614_v54 = vmul.f32 0.3275911, %v3367_v24  ;;  %v816_v36 = vor.u32 1.1754944e-38, %v815_v13  ;;  %v3401_v7 = vsel %vm517_vm2, 1.0, %v4344_v6 }
 0x135   : > { %4444 = vst [vmem:[#allocation4_spill] sm:$0xff] %v3392_v52  ;;  %v1713_v46 = vpack.c.bf16 %v1685_v4, %v1683_v56  ;;  %vm814_vm6 = vcmp.eq.f32.partialorder %v813_v47, 8.507059e+37  ;;  %v1142_v45 = vmul.f32 1.0614054, %v3380_v43  ;;  %v3405_v19 = vand.u32 2147483647, %v3376_v0 }
 0x136   : > { %4445 = vst [vmem:[#allocation8_spill] sm:$0xff] %v3401_v7  ;;  %v3407_v58 = vsel %vm814_vm6, %v816_v36, %v812_v5  ;;  %v793_v60 = vadd.f32 %v4447_v26, %v4446_v55  ;;  %vm795_vm7 = vweird.f32 %v4447_v26  ;;  %2275 = vrcp.f32 %v3392_v52  ;;  %v4452_v5 = vld [vmem:[#allocation46_spill] sm:$0xff] }
 0x137   : > { %1920 = vmatmul.bf16.gmra.mxu3 %v1713_v46  ;;  %v3414_v37 = vmul.f32 0.5, %v3316_v27  ;;  %v1144_v53 = vmul.f32 1.0614054, %v3407_v58  ;;  %v1174_v23 = vadd.f32 -1.4531521, %v1142_v45  ;;  %v3417_v47 = vpop.eup %2273  ;;  %2277 = vpow2.f32 %v1530_v57  ;;  %vm3426_vm8 = vmor %vm794_vm1, %vm795_vm7  ;;  %v4453_v57 = vld [vmem:[#allocation32_spill] sm:$0xff] }
 0x138   : > { %v1532_v61 = vmul.f32 1.442695, %v1477_v2  ;;  %v3419_v36 = vadd.f32 1.0, %v614_v54  ;;  %v798_v13 = vand.u32 2147483647, %v4438_v48  ;;  %v1446_v34 = vsub.f32 0.0, %v3367_v24 }
 0x139   : > { %4448 = vst [vmem:[#allocation7_spill] sm:$0xff] %v3414_v37  ;;  %v1176_v56 = vadd.f32 -1.4531521, %v1144_v53  ;;  %v1206_v46 = vmul.f32 %v1174_v23, %v3380_v43  ;;  %v800_v9 = vand.u32 2147483648, %v4438_v48  ;;  %v615_v4 = vmul.f32 0.3275911, %v3405_v19 }
 0x13a   : > { %4449 = vst [vmem:[#allocation15_spill] sm:$0xff] %v3419_v36  ;;  %v797_v54 = vsel %vm3426_vm8, %v4447_v26, %v793_v60  ;;  %v823_v2 = vadd.f32 %v4453_v57, %v4452_v5  ;;  %vm825_vm9 = vweird.f32 %v4453_v57  ;;  %v828_v23 = vand.u32 2147483647, %v4441_v14 }
 0x13b   : > { %v1208_v45 = vmul.f32 %v1176_v56, %v3407_v58  ;;  %v1238_v55 = vadd.f32 1.4214138, %v1206_v46  ;;  %v801_v53 = vor.u32 1.1754944e-38, %v800_v9  ;;  %v985_v48 = vmul.f32 %v3417_v47, %v3359_v41  ;;  %vm3445_vm11 = vmor %vm824_vm5, %vm825_vm9 }
 0x13c   : > { %2279 = vrcp.f32 %v3419_v36  ;;  %vm799_vm10 = vcmp.eq.f32.partialorder %v798_v13, 8.507059e+37  ;;  %v830_v60 = vand.u32 2147483648, %v4441_v14  ;;  %v3450_v27 = vpop.eup %2275  ;;  %v827_v5 = vsel %vm3445_vm11, %v4453_v57, %v823_v2 }
 0x13d   : > { %4456 = vst [vmem:[#allocation16_spill] sm:$0xff] %v3450_v27  ;;  %v1240_v56 = vadd.f32 1.4214138, %v1208_v45  ;;  %v1270_v46 = vmul.f32 %v1238_v55, %v3380_v43  ;;  %v3453_v9 = vsel %vm799_vm10, %v801_v53, %v797_v54  ;;  %v3458_v13 = vpop.eup %2277  ;;  %vm518_vm12 = vcmp.ge.f32.partialorder %v3342_v63, 0.0  ;;  %v373_v54 = vpop.f32.mrf.mxu0 }
 0x13e   : > { %4457 = vst [vmem:[#allocation22_spill] sm:$0xff] %v3458_v13  ;;  %v1478_v37 = vmul.f32 %v1446_v34, %v3367_v24  ;;  %v831_v7 = vor.u32 1.1754944e-38, %v830_v60  ;;  %v1143_v14 = vmul.f32 1.0614054, %v3453_v9  ;;  %v3463_v40 = vadd.f32 1.0, %v615_v4  ;;  %v4461_v13 = vld [vmem:[#allocation31_spill] sm:$0xff] }
 0x13f   : > { %v1272_v45 = vmul.f32 %v1240_v56, %v3407_v58  ;;  %v1302_v55 = vadd.f32 -0.28449672, %v1270_v46  ;;  %vm829_vm13 = vcmp.eq.f32.partialorder %v828_v23, 8.507059e+37  ;;  %v986_v53 = vsub.f32 1.0, %v985_v48 }
 0x140   : > { %4458 = vst [vmem:[#allocation5_spill] sm:$0xff] %v3463_v40  ;;  %v1000_v57 = vmul.f32 %v3450_v27, %v3392_v52  ;;  %v3468_v2 = vsel %vm829_vm13, %v831_v7, %v827_v5  ;;  %v1175_v26 = vadd.f32 -1.4531521, %v1143_v14  ;;  %v3471_v63 = vsel %vm518_vm12, 1.0, %v4344_v6 }
 0x141   : > { %4459 = vst [vmem:[#allocation11_spill] sm:$0xff] %v3471_v63  ;;  %v1304_v24 = vadd.f32 -0.28449672, %v1272_v45  ;;  %v1334_v34 = vmul.f32 %v1302_v55, %v3380_v43  ;;  %v1145_v4 = vmul.f32 1.0614054, %v3468_v2  ;;  %v1447_v23 = vsub.f32 0.0, %v3405_v19 }
 0x142   : > { %v3475_v60 = vpop.eup %2279  ;;  %v1534_v56 = vmul.f32 1.442695, %v1478_v37  ;;  %v1207_v48 = vmul.f32 %v1175_v26, %v3453_v9  ;;  %v3480_v46 = vadd.f32 %v373_v54, %v2453_v49  ;;  %2281 = vrcp.f32 %v3463_v40  ;;  %v422_v37 = vpop.f32.mrf.mxu1 }
 0x143   : > { %4460 = vst [vmem:[#allocation39_spill] sm:$0xff] %v3475_v60  ;;  %v1336_v7 = vmul.f32 %v1304_v24, %v3407_v58  ;;  %v1366_v5 = vadd.f32 0.2548296, %v1334_v34  ;;  %v1177_v14 = vadd.f32 -1.4531521, %v1145_v4  ;;  %v3485_v45 = vmul.f32 %v3417_v47, %v986_v53  ;;  %v4463_v4 = vld [vmem:[#allocation33_spill] sm:$0xff] }
 0x144   : > { %v1001_v55 = vsub.f32 1.0, %v1000_v57  ;;  %2283 = vpow2.f32 %v1532_v61  ;;  %v1239_v63 = vadd.f32 1.4214138, %v1207_v48  ;;  %vm839_vm14 = vweird.f32 %v4461_v13 }
 0x145   : > { %v1015_v26 = vmul.f32 %v3475_v60, %v3419_v36  ;;  %v1368_v54 = vadd.f32 0.2548296, %v1336_v7  ;;  %v1398_v52 = vmul.f32 %v1366_v5, %v3380_v43  ;;  %v1209_v25 = vmul.f32 %v1177_v14, %v3468_v2  ;;  %v4468_v36 = vld [vmem:[#allocation19_spill] sm:$0xff] }
 0x146   : > { %v3493_v24 = vmul.f32 0.5, %v3362_v44  ;;  %v1479_v53 = vmul.f32 %v1447_v23, %v3405_v19  ;;  %v1271_v57 = vmul.f32 %v1239_v63, %v3453_v9  ;;  %v3498_v61 = vmul.f32 0.70710677, %v3480_v46  ;;  %v4465_v23 = vld [vmem:[#allocation40_spill] sm:$0xff] }
 0x147   : > { %2285 = vpow2.f32 %v1534_v56  ;;  %v1400_v34 = vmul.f32 %v1368_v54, %v3407_v58  ;;  %v1558_v48 = vmul.f32 %v4463_v4, %v1398_v52  ;;  %v1241_v7 = vadd.f32 1.4214138, %v1209_v25  ;;  %v376_v58 = vpop.f32.mrf.mxu0 }
 0x148   : > { %4462 = vst [vmem:[#allocation25_spill] sm:$0xff] %v3493_v24  ;;  %v3503_v43 = vmul.f32 %v3450_v27, %v1001_v55  ;;  %vm519_vm15 = vcmp.ge.f32.partialorder %v3376_v0, 0.0  ;;  %v1303_v44 = vadd.f32 -0.28449672, %v1271_v57  ;;  %v423_v5 = vadd.f32 %v422_v37, %v2455_v50  ;;  %v3507_v19 = vpop.eup %2281  ;;  %v4467_v57 = vld [vmem:[#allocation44_spill] sm:$0xff] }
 0x149   : > { %v1016_v63 = vsub.f32 1.0, %v1015_v26  ;;  %v1560_v14 = vmul.f32 %v4465_v23, %v1400_v34  ;;  %v1590_v24 = vsub.f32 1.0, %v1558_v48  ;;  %v1273_v56 = vmul.f32 %v1241_v7, %v3468_v2 }
 0x14a   : > { %4464 = vst [vmem:[#allocation46_spill] sm:$0xff] %v3503_v43  ;;  %v3511_v54 = vpop.eup %2283  ;;  %v1536_v25 = vmul.f32 1.442695, %v1479_v53  ;;  %v1335_v52 = vmul.f32 %v1303_v44, %v3453_v9  ;;  %v584_v55 = vand.u32 2147483647, %v3498_v61  ;;  %v838_v4 = vadd.f32 %v4467_v57, %v3023_v20 }
 0x14b   : > { %4466 = vst [vmem:[#allocation32_spill] sm:$0xff] %v3511_v54  ;;  %v1592_v37 = vsub.f32 1.0, %v1560_v14  ;;  %v1622_v27 = vmul.f32 %v1590_v24, %v4468_v36  ;;  %v1305_v26 = vadd.f32 -0.28449672, %v1273_v56  ;;  %vm840_vm1 = vweird.f32 %v4467_v57  ;;  %v4472_v36 = vld [vmem:[#allocation28_spill] sm:$0xff]  ;;  %v425_v54 = vpop.f32.mrf.mxu1 }
 0x14c   : > { %v1030_v34 = vmul.f32 %v3507_v19, %v3463_v40  ;;  %v1367_v48 = vadd.f32 0.2548296, %v1335_v52  ;;  %v3521_v7 = vmul.f32 0.70710677, %v423_v5  ;;  %v3524_v53 = vadd.f32 %v376_v58, %v2453_v49  ;;  %vm3543_vm2 = vmor %vm839_vm14, %vm840_vm1  ;;  %v4479_v40 = vld [vmem:[#allocation13_spill] sm:$0xff] }
 0x14d   : > { %v3526_v44 = vpop.eup %2285  ;;  %v3531_v20 = vsel %vm519_vm15, 1.0, %v4344_v6  ;;  %v1624_v24 = vmul.f32 %v1592_v37, %v4472_v36  ;;  %v1654_v23 = vadd.f32 1.0, %v1622_v27  ;;  %v1337_v14 = vmul.f32 %v1305_v26, %v3468_v2 }
 0x14e   : > { %4469 = vst [vmem:[#allocation31_spill] sm:$0xff] %v3524_v53  ;;  %v3536_v56 = vmul.f32 %v3475_v60, %v1016_v63  ;;  %2287 = vpow2.f32 %v1536_v25  ;;  %v1399_v52 = vmul.f32 %v1367_v48, %v3453_v9  ;;  %v616_v58 = vmul.f32 0.3275911, %v584_v55  ;;  %v4476_v9 = vld [vmem:[#allocation36_spill] sm:$0xff] }
 0x14f   : > { %4470 = vst [vmem:[#allocation33_spill] sm:$0xff] %v3526_v44  ;;  %v1656_v37 = vadd.f32 1.0, %v1624_v24  ;;  %v1369_v27 = vadd.f32 0.2548296, %v1337_v14  ;;  %v842_v63 = vsel %vm3543_vm2, %v4467_v57, %v838_v4  ;;  %v845_v25 = vand.u32 2147483648, %v4461_v13  ;;  %v4478_v44 = vld [vmem:[#allocation43_spill] sm:$0xff] }
 0x150   : > { %4471 = vst [vmem:[#allocation40_spill] sm:$0xff] %v3531_v20  ;;  %v1031_v26 = vsub.f32 1.0, %v1030_v34  ;;  %v1559_v48 = vmul.f32 %v4476_v9, %v1399_v52  ;;  %v585_v36 = vand.u32 2147483647, %v3521_v7  ;;  %v3554_v20 = vmul.f32 0.70710677, %v3524_v53 }
 0x151   : > { %4473 = vst [vmem:[#allocation44_spill] sm:$0xff] %v3536_v56  ;;  %vm869_vm3 = vweird.f32 %v4478_v44  ;;  %v1686_v60 = vmul.f32 %v1654_v23, %v4479_v40  ;;  %v4480_v24 = vld [vmem:[#allocation24_spill] sm:$0xff]  ;;  %v1401_v56 = vmul.f32 %v1369_v27, %v3468_v2  ;;  %v3561_v57 = vadd.f32 %v425_v54, %v2455_v50  ;;  %v4484_v54 = vld [vmem:[#allocation21_spill] sm:$0xff] }
 0x152   : > { %4477 = vst [vmem:[#allocation19_spill] sm:$0xff] %v3554_v20  ;;  %v1688_v14 = vmul.f32 %v1656_v37, %v4480_v24  ;;  %v1591_v4 = vsub.f32 1.0, %v1559_v48  ;;  %v3563_v34 = vadd.f32 1.0, %v616_v58  ;;  %v1448_v52 = vsub.f32 0.0, %v584_v55  ;;  %v4482_v53 = vld [vmem:[#allocation48_spill] sm:$0xff] }
 0x153   : > { %4481 = vst [vmem:[#allocation28_spill] sm:$0xff] %v3561_v57  ;;  %v843_v0 = vand.u32 2147483647, %v4461_v13  ;;  %v1561_v43 = vmul.f32 %v4482_v53, %v1401_v56  ;;  %v3568_v16 = vmul.f32 0.5, %v3480_v46  ;;  %v3570_v40 = vmul.f32 0.5, %v423_v5  ;;  %v4486_v56 = vld [vmem:[#allocation30_spill] sm:$0xff] }
 0x154   : > { %v1714_v9 = vpack.c.bf16 %v1688_v14, %v1686_v60  ;;  %v3572_v23 = vpop.eup %2287  ;;  %v3575_v2 = vmul.f32 %v3507_v19, %v1031_v26  ;;  %v1623_v37 = vmul.f32 %v1591_v4, %v4484_v54  ;;  %v617_v58 = vmul.f32 0.3275911, %v585_v36 }
 0x155   : > { %4483 = vst [vmem:[#allocation36_spill] sm:$0xff] %v3570_v40  ;;  %v586_v27 = vand.u32 2147483647, %v3554_v20  ;;  %v1593_v13 = vsub.f32 1.0, %v1561_v43  ;;  %vm520_vm4 = vcmp.ge.f32.partialorder %v3498_v61, 0.0  ;;  %v846_v46 = vor.u32 1.1754944e-38, %v845_v25 }
 0x156   : > { %1876 = vmatmul.bf16.gmra.mxu2 %v1714_v9  ;;  %v3581_v60 = vmul.f32 0.70710677, %v3561_v57  ;;  %2289 = vrcp.f32 %v3563_v34  ;;  %v1480_v5 = vmul.f32 %v1448_v52, %v584_v55  ;;  %v1449_v53 = vsub.f32 0.0, %v585_v36  ;;  %v4487_v43 = vld [vmem:[#allocation38_spill] sm:$0xff] }
 0x157   : > { %vm844_vm5 = vcmp.eq.f32.partialorder %v843_v0, 8.507059e+37  ;;  %v1625_v26 = vmul.f32 %v1593_v13, %v4486_v56  ;;  %v1655_v48 = vadd.f32 1.0, %v1623_v37  ;;  %v868_v14 = vadd.f32 %v2982_v3, %v3077_v8 }
 0x158   : > { %4485 = vst [vmem:[#allocation43_spill] sm:$0xff] %v3581_v60  ;;  %v3585_v24 = vsel %vm844_vm5, %v846_v46, %v842_v63  ;;  %vm854_vm6 = vweird.f32 %v4487_v43  ;;  %v3591_v61 = vsel %vm520_vm4, 1.0, %v4344_v6  ;;  %vm521_vm7 = vcmp.ge.f32.partialorder %v3521_v7, 0.0  ;;  %v4491_v46 = vld [vmem:[#allocation26_spill] sm:$0xff] }
 0x159   : > { %v3594_v25 = vadd.f32 1.0, %v617_v58  ;;  %v618_v55 = vmul.f32 0.3275911, %v586_v27  ;;  %v1657_v4 = vadd.f32 1.0, %v1625_v26  ;;  %v3597_v52 = vand.u32 2147483647, %v3581_v60 }
 0x15a   : > { %vm870_vm8 = vweird.f32 %v2982_v3  ;;  %v873_v63 = vand.u32 2147483647, %v4478_v44  ;;  %vm884_vm9 = vweird.f32 %v2984_v29  ;;  %v1538_v8 = vmul.f32 1.442695, %v1480_v5  ;;  %v4490_v58 = vld [vmem:[#allocation20_spill] sm:$0xff] }
 0x15b   : > { %v1481_v0 = vmul.f32 %v1449_v53, %v585_v36  ;;  %vm3604_vm10 = vmor %vm869_vm3, %vm870_vm8  ;;  %v875_v54 = vand.u32 2147483648, %v4478_v44  ;;  %v1146_v37 = vmul.f32 1.0614054, %v3585_v24  ;;  %v1687_v13 = vmul.f32 %v1655_v48, %v4490_v58 }
 0x15c   : > { %v1689_v56 = vmul.f32 %v1657_v4, %v4491_v46  ;;  %v619_v26 = vmul.f32 0.3275911, %v3597_v52  ;;  %v872_v36 = vsel %vm3604_vm10, %v2982_v3, %v868_v14  ;;  %v3616_v5 = vpop.eup %2289  ;;  %2291 = vrcp.f32 %v3594_v25 }
 0x15d   : > { %v3619_v53 = vadd.f32 1.0, %v618_v55  ;;  %v876_v57 = vor.u32 1.1754944e-38, %v875_v54  ;;  %v1178_v44 = vadd.f32 -1.4531521, %v1146_v37  ;;  %v1450_v40 = vsub.f32 0.0, %v586_v27 }
 0x15e   : > { %v1715_v60 = vpack.c.bf16 %v1689_v56, %v1687_v13  ;;  %v3621_v20 = vadd.f32 1.0, %v619_v26  ;;  %vm874_vm11 = vcmp.eq.f32.partialorder %v873_v63, 8.507059e+37  ;;  %v853_v3 = vadd.f32 %v2953_v11, %v3066_v32 }
 0x15f   : > { %v3623_v48 = vsel %vm874_vm11, %v876_v57, %v872_v36  ;;  %v1210_v4 = vmul.f32 %v1178_v44, %v3585_v24  ;;  %vm855_vm12 = vweird.f32 %v2953_v11  ;;  %v1045_v14 = vmul.f32 %v3616_v5, %v3563_v34 }
 0x160   : > { %1925 = vmatmul.bf16.gmra.mxu3 %v1715_v60  ;;  %2293 = vpow2.f32 %v1538_v8  ;;  %v3634_v55 = vsel %vm521_vm7, 1.0, %v4344_v6  ;;  %v1148_v57 = vmul.f32 1.0614054, %v3623_v48  ;;  %v1540_v63 = vmul.f32 1.442695, %v1481_v0  ;;  %vm3641_vm13 = vmor %vm854_vm6, %vm855_vm12  ;;  %v427_v60 = vpop.f32.mrf.mxu1 }
 0x161   : > { %2295 = vrcp.f32 %v3619_v53  ;;  %v1242_v9 = vadd.f32 1.4214138, %v1210_v4  ;;  %v858_v32 = vand.u32 2147483647, %v4487_v43  ;;  %v1482_v54 = vmul.f32 %v1450_v40, %v586_v27 }
 0x162   : > { %v1180_v37 = vadd.f32 -1.4531521, %v1148_v57  ;;  %v860_v7 = vand.u32 2147483648, %v4487_v43  ;;  %v883_v8 = vadd.f32 %v3031_v42, %v3085_v59  ;;  %v3648_v58 = vpop.eup %2291  ;;  %2297 = vrcp.f32 %v3621_v20 }
 0x163   : > { %v1274_v0 = vmul.f32 %v1242_v9, %v3585_v24  ;;  %v857_v40 = vsel %vm3641_vm13, %v2953_v11, %v853_v3  ;;  %vm885_vm14 = vweird.f32 %v3031_v42  ;;  %v888_v59 = vand.u32 2147483647, %v2984_v29 }
 0x164   : > { %v1212_v27 = vmul.f32 %v1180_v37, %v3623_v48  ;;  %v861_v13 = vor.u32 1.1754944e-38, %v860_v7  ;;  %vm3659_vm15 = vmor %vm884_vm9, %vm885_vm14  ;;  %v890_v46 = vand.u32 2147483648, %v2984_v29  ;;  %v1046_v56 = vsub.f32 1.0, %v1045_v14 }
 0x165   : > { %v1306_v26 = vadd.f32 -0.28449672, %v1274_v0  ;;  %vm859_vm1 = vcmp.eq.f32.partialorder %v858_v32, 8.507059e+37  ;;  %v887_v11 = vsel %vm3659_vm15, %v3031_v42, %v883_v8  ;;  %v1060_v44 = vmul.f32 %v3648_v58, %v3594_v25  ;;  %v378_v32 = vpop.f32.mrf.mxu0 }
 0x166   : > { %v3668_v36 = vpop.eup %2293  ;;  %v1244_v4 = vadd.f32 1.4214138, %v1212_v27  ;;  %v3672_v3 = vsel %vm859_vm1, %v861_v13, %v857_v40  ;;  %v891_v57 = vor.u32 1.1754944e-38, %v890_v46  ;;  %v1542_v37 = vmul.f32 1.442695, %v1482_v54 }
 0x167   : > { %v3674_v9 = vpop.eup %2295  ;;  %v1338_v29 = vmul.f32 %v1306_v26, %v3585_v24  ;;  %vm889_vm2 = vcmp.eq.f32.partialorder %v888_v59, 8.507059e+37  ;;  %v1147_v14 = vmul.f32 1.0614054, %v3672_v3  ;;  %v3682_v8 = vadd.f32 %v378_v32, %v2453_v49 }
 0x168   : > { %v1276_v42 = vmul.f32 %v1244_v4, %v3623_v48  ;;  %v3679_v7 = vsel %vm889_vm2, %v891_v57, %v887_v11  ;;  %v3685_v0 = vadd.f32 %v427_v60, %v2455_v50  ;;  %v3687_v40 = vpop.eup %2297  ;;  %v3690_v54 = vmul.f32 %v3616_v5, %v1046_v56 }
 0x169   : > { %4496 = vst [vmem:[#allocation13_spill] sm:$0xff] %v3682_v8  ;;  %2299 = vpow2.f32 %v1540_v63  ;;  %v1370_v27 = vadd.f32 0.2548296, %v1338_v29  ;;  %v1149_v13 = vmul.f32 1.0614054, %v3679_v7  ;;  %v1061_v43 = vsub.f32 1.0, %v1060_v44 }
 0x16a   : > { %4497 = vst [vmem:[#allocation24_spill] sm:$0xff] %v3685_v0  ;;  %v1075_v59 = vmul.f32 %v3674_v9, %v3619_v53  ;;  %v1308_v46 = vadd.f32 -0.28449672, %v1276_v42  ;;  %v1179_v26 = vadd.f32 -1.4531521, %v1147_v14  ;;  %vm899_vm3 = vweird.f32 %v3002_v33  ;;  %v4500_v29 = vld [vmem:[#allocation49_spill] sm:$0xff] }
 0x16b   : > { %2301 = vpow2.f32 %v1542_v37  ;;  %v1402_v49 = vmul.f32 %v1370_v27, %v3585_v24  ;;  %v1181_v50 = vadd.f32 -1.4531521, %v1149_v13  ;;  %v3698_v11 = vmul.f32 0.70710677, %v3682_v8 }
 0x16c   : > { %v1451_v63 = vsub.f32 0.0, %v3597_v52  ;;  %v1340_v56 = vmul.f32 %v1308_v46, %v3623_v48  ;;  %v1211_v44 = vmul.f32 %v1179_v26, %v3672_v3  ;;  %v3704_v4 = vmul.f32 0.70710677, %v3685_v0 }
 0x16d   : > { %4498 = vst [vmem:[#allocation48_spill] sm:$0xff] %v3698_v11  ;;  %v1090_v57 = vmul.f32 %v3687_v40, %v3621_v20  ;;  %v1562_v37 = vmul.f32 %v4500_v29, %v1402_v49  ;;  %v1213_v24 = vmul.f32 %v1181_v50, %v3679_v7  ;;  %v588_v14 = vand.u32 2147483647, %v3698_v11 }
 0x16e   : > { %4499 = vst [vmem:[#allocation21_spill] sm:$0xff] %v3704_v4  ;;  %v3712_v32 = vmul.f32 %v3648_v58, %v1061_v43  ;;  %v1076_v60 = vsub.f32 1.0, %v1075_v59  ;;  %v1372_v42 = vadd.f32 0.2548296, %v1340_v56  ;;  %v1243_v27 = vadd.f32 1.4214138, %v1211_v44 }
 0x16f   : > { %v3714_v13 = vpop.eup %2299  ;;  %v1594_v46 = vsub.f32 1.0, %v1562_v37  ;;  %v1245_v26 = vadd.f32 1.4214138, %v1213_v24  ;;  %v620_v0 = vmul.f32 0.3275911, %v588_v14  ;;  %v898_v8 = vadd.f32 %v3044_v51, %v3101_v62  ;;  %v4502_v44 = vld [vmem:[#allocation34_spill] sm:$0xff] }
 0x170   : > { %vm929_vm4 = vweird.f32 %v3117_v17  ;;  %v1404_v49 = vmul.f32 %v1372_v42, %v3623_v48  ;;  %v1275_v50 = vmul.f32 %v1243_v27, %v3672_v3  ;;  %v3722_v43 = vand.u32 2147483647, %v3704_v4  ;;  %v4503_v62 = vld [vmem:[#allocation53_spill] sm:$0xff] }
 0x171   : > { %vm900_vm5 = vweird.f32 %v3044_v51  ;;  %v3725_v59 = vpop.eup %2301  ;;  %v1091_v56 = vsub.f32 1.0, %v1090_v57  ;;  %v1626_v29 = vmul.f32 %v1594_v46, %v4502_v44  ;;  %v1277_v37 = vmul.f32 %v1245_v26, %v3679_v7 }
 0x172   : > { %4501 = vst [vmem:[#allocation30_spill] sm:$0xff] %v3725_v59  ;;  %v3729_v24 = vadd.f32 1.0, %v620_v0  ;;  %v1564_v11 = vmul.f32 %v4503_v62, %v1404_v49  ;;  %v1307_v6 = vadd.f32 -0.28449672, %v1275_v50  ;;  %v1452_v48 = vsub.f32 0.0, %v588_v14  ;;  %vm3746_vm6 = vmor %vm899_vm3, %vm900_vm5 }
 0x173   : > { %v621_v42 = vmul.f32 0.3275911, %v3722_v43  ;;  %v1309_v27 = vadd.f32 -0.28449672, %v1277_v37  ;;  %v903_v4 = vand.u32 2147483647, %v3002_v33  ;;  %v3737_v57 = vmul.f32 %v1451_v63, %v3597_v52 }
 0x174   : > { %2303 = vrcp.f32 %v3729_v24  ;;  %v905_v59 = vand.u32 2147483648, %v3002_v33  ;;  %v1596_v46 = vsub.f32 1.0, %v1564_v11  ;;  %v1339_v0 = vmul.f32 %v1307_v6, %v3672_v3  ;;  %v4506_v33 = vld [vmem:[#allocation45_spill] sm:$0xff] }
 0x175   : > { %v3740_v26 = vadd.f32 1.0, %v621_v42  ;;  %vm914_vm7 = vweird.f32 %v3014_v10  ;;  %v3752_v50 = vmul.f32 %v3674_v9, %v1076_v60  ;;  %v1658_v52 = vadd.f32 1.0, %v1626_v29 }
 0x176   : > { %v1341_v11 = vmul.f32 %v1309_v27, %v3679_v7  ;;  %v902_v6 = vsel %vm3746_vm6, %v3044_v51, %v898_v8  ;;  %v3759_v63 = vmul.f32 %v3687_v40, %v1091_v56  ;;  %v1628_v44 = vmul.f32 %v1596_v46, %v4506_v33  ;;  %v4507_v8 = vld [vmem:[#allocation29_spill] sm:$0xff]  ;;  %v4511_v46 = vld [vmem:[#allocation51_spill] sm:$0xff] }
 0x177   : > { %v1371_v37 = vadd.f32 0.2548296, %v1339_v0  ;;  %v3762_v62 = vmul.f32 %v1452_v48, %v588_v14  ;;  %2305 = vrcp.f32 %v3740_v26  ;;  %vm904_vm8 = vcmp.eq.f32.partialorder %v903_v4, 8.507059e+37 }
 0x178   : > { %v1373_v42 = vadd.f32 0.2548296, %v1341_v11  ;;  %v906_v60 = vor.u32 1.1754944e-38, %v905_v59  ;;  %v1660_v29 = vadd.f32 1.0, %v1628_v44  ;;  %v928_v49 = vadd.f32 %v3186_v15, %v3282_v12  ;;  %v4510_v12 = vld [vmem:[#allocation41_spill] sm:$0xff] }
 0x179   : > { %v1403_v27 = vmul.f32 %v1371_v37, %v3672_v3  ;;  %vm930_vm9 = vweird.f32 %v3186_v15  ;;  %v1690_v56 = vmul.f32 %v1658_v52, %v4507_v8  ;;  %v933_v3 = vand.u32 2147483647, %v3117_v17 }
 0x17a   : > { %v3769_v51 = vpop.eup %2303  ;;  %v1405_v14 = vmul.f32 %v1373_v42, %v3679_v7  ;;  %v3773_v48 = vsel %vm904_vm8, %v906_v60, %v902_v6  ;;  %vm3777_vm10 = vmor %vm929_vm4, %vm930_vm9  ;;  %vm944_vm11 = vweird.f32 %v3168_v28  ;;  %v1692_v59 = vmul.f32 %v1660_v29, %v4510_v12 }
 0x17b   : > { %v1563_v0 = vmul.f32 %v4511_v46, %v1403_v27  ;;  %v1105_v52 = vmul.f32 %v3769_v51, %v3729_v24  ;;  %v932_v7 = vsel %vm3777_vm10, %v3186_v15, %v928_v49  ;;  %vm3791_vm12 = vcmp.eq.f32.partialorder %v933_v3, 8.507059e+37  ;;  %v4517_v3 = vld [vmem:[#allocation50_spill] sm:$0xff] }
 0x17c   : > { %v1565_v11 = vmul.f32 %v3098_v38, %v1405_v14  ;;  %v935_v33 = vand.u32 2147483648, %v3117_v17  ;;  %v1150_v44 = vmul.f32 1.0614054, %v3773_v48  ;;  %v1716_v37 = vpack.c.bf16 %v1692_v59, %v1690_v56  ;;  %v4514_v38 = vld [vmem:[#allocation37_spill] sm:$0xff] }
 0x17d   : > { %v1595_v42 = vsub.f32 1.0, %v1563_v0  ;;  %v1106_v60 = vsub.f32 1.0, %v1105_v52  ;;  %v913_v29 = vadd.f32 %v3071_v18, %v3124_v39  ;;  %v3799_v27 = vpop.eup %2305  ;;  %vm915_vm13 = vweird.f32 %v3071_v18 }
 0x17e   : > { %v1597_v8 = vsub.f32 1.0, %v1565_v11  ;;  %v936_v15 = vor.u32 1.1754944e-38, %v935_v33  ;;  %v1182_v49 = vadd.f32 -1.4531521, %v1150_v44  ;;  %vm959_vm14 = vweird.f32 %v3203_v35  ;;  %1881 = vmatmul.bf16.gmra.mxu2 %v1716_v37  ;;  %vm3811_vm15 = vmor %vm914_vm7, %vm915_vm13 }
 0x17f   : > { %v1627_v17 = vmul.f32 %v1595_v42, %v4514_v38  ;;  %v3805_v14 = vmul.f32 %v3769_v51, %v1106_v60  ;;  %v1120_v56 = vmul.f32 %v3799_v27, %v3740_v26  ;;  %v918_v4 = vand.u32 2147483647, %v3014_v10  ;;  %v4520_v60 = vld [vmem:[#allocation35_spill] sm:$0xff] }
 0x180   : > { %v1629_v12 = vmul.f32 %v1597_v8, %v4517_v3  ;;  %v3819_v59 = vsel %vm3791_vm12, %v936_v15, %v932_v7  ;;  %v1214_v46 = vmul.f32 %v1182_v49, %v3773_v48  ;;  %v917_v0 = vsel %vm3811_vm15, %v3071_v18, %v913_v29  ;;  %v4521_v15 = vld [vmem:[#allocation42_spill] sm:$0xff] }
 0x181   : > { %v1659_v52 = vadd.f32 1.0, %v1627_v17  ;;  %v1121_v11 = vsub.f32 1.0, %v1120_v56  ;;  %v1152_v33 = vmul.f32 1.0614054, %v3819_v59  ;;  %vm3826_vm1 = vcmp.eq.f32.partialorder %v918_v4, 8.507059e+37 }
 0x182   : > { %v1661_v37 = vadd.f32 1.0, %v1629_v12  ;;  %v1246_v42 = vadd.f32 1.4214138, %v1214_v46  ;;  %v920_v6 = vand.u32 2147483648, %v3014_v10  ;;  %v943_v7 = vadd.f32 %v3230_v30, %v3305_v22 }
 0x183   : > { %vm989_vm2 = vweird.f32 %v3359_v41  ;;  %v1691_v8 = vmul.f32 %v1659_v52, %v4520_v60  ;;  %v3836_v18 = vmul.f32 %v3799_v27, %v1121_v11  ;;  %v1184_v29 = vadd.f32 -1.4531521, %v1152_v33 }
 0x184   : > { %vm945_vm3 = vweird.f32 %v3230_v30  ;;  %v1693_v49 = vmul.f32 %v1661_v37, %v4521_v15  ;;  %v1278_v38 = vmul.f32 %v1246_v42, %v3773_v48  ;;  %v921_v17 = vor.u32 1.1754944e-38, %v920_v6 }
 0x185   : > { %vm3843_vm4 = vmor %vm944_vm11, %vm945_vm3  ;;  %v948_v22 = vand.u32 2147483647, %v3168_v28  ;;  %v1216_v56 = vmul.f32 %v1184_v29, %v3819_v59  ;;  %v950_v4 = vand.u32 2147483648, %v3168_v28  ;;  %v958_v3 = vadd.f32 %v3256_v1, %v3309_v21 }
 0x186   : > { %v947_v39 = vsel %vm3843_vm4, %v3230_v30, %v943_v7  ;;  %v1717_v12 = vpack.c.bf16 %v1693_v49, %v1691_v8  ;;  %v1310_v46 = vadd.f32 -0.28449672, %v1278_v38  ;;  %v3857_v52 = vsel %vm3826_vm1, %v921_v17, %v917_v0 }
 0x187   : > { %vm949_vm5 = vcmp.eq.f32.partialorder %v948_v22, 8.507059e+37  ;;  %vm974_vm6 = vweird.f32 %v3211_v31  ;;  %v1248_v11 = vadd.f32 1.4214138, %v1216_v56  ;;  %v951_v33 = vor.u32 1.1754944e-38, %v950_v4 }
 0x188   : > { %v1151_v37 = vmul.f32 1.0614054, %v3857_v52  ;;  %vm960_vm7 = vweird.f32 %v3256_v1  ;;  %1930 = vmatmul.bf16.gmra.mxu3 %v1717_v12  ;;  %v1342_v28 = vmul.f32 %v1310_v46, %v3773_v48  ;;  %v963_v21 = vand.u32 2147483647, %v3203_v35 }
 0x189   : > { %vm3865_vm8 = vmor %vm959_vm14, %vm960_vm7  ;;  %v965_v0 = vand.u32 2147483648, %v3203_v35  ;;  %v988_v44 = vadd.f32 %v3417_v47, %v3485_v45  ;;  %v1280_v42 = vmul.f32 %v1248_v11, %v3819_v59  ;;  %v3874_v6 = vsel %vm949_vm5, %v951_v33, %v947_v39 }
 0x18a   : > { %v1183_v7 = vadd.f32 -1.4531521, %v1151_v37  ;;  %v962_v60 = vsel %vm3865_vm8, %v3256_v1, %v958_v3  ;;  %v1374_v8 = vadd.f32 0.2548296, %v1342_v28  ;;  %v1153_v29 = vmul.f32 1.0614054, %v3874_v6 }
 0x18b   : > { %vm964_vm9 = vcmp.eq.f32.partialorder %v963_v21, 8.507059e+37  ;;  %v966_v15 = vor.u32 1.1754944e-38, %v965_v0  ;;  %v1312_v49 = vadd.f32 -0.28449672, %v1280_v42  ;;  %vm990_vm10 = vweird.f32 %v3417_v47  ;;  %v4529_v28 = vld [vmem:[#allocation23_spill] sm:$0xff]  ;;  %v4531_v21 = vld [vmem:[#allocation4_spill] sm:$0xff] }
 0x18c   : > { %v1215_v35 = vmul.f32 %v1183_v7, %v3857_v52  ;;  %v993_v45 = vand.u32 2147483647, %v3359_v41  ;;  %v1406_v38 = vmul.f32 %v1374_v8, %v3773_v48  ;;  %v1185_v17 = vadd.f32 -1.4531521, %v1153_v29  ;;  %vm3888_vm11 = vmor %vm989_vm2, %vm990_vm10  ;;  %v4528_v48 = vld [vmem:[#allocation56_spill] sm:$0xff]  ;;  %v4535_v1 = vld [vmem:[#allocation62_spill] sm:$0xff] }
 0x18d   : > { %v3884_v10 = vsel %vm964_vm9, %v966_v15, %v962_v60  ;;  %v995_v22 = vand.u32 2147483648, %v3359_v41  ;;  %v1344_v56 = vmul.f32 %v1312_v49, %v3819_v59  ;;  %v992_v4 = vsel %vm3888_vm11, %v3417_v47, %v988_v44  ;;  %v4530_v41 = vld [vmem:[#allocation61_spill] sm:$0xff]  ;;  %v4534_v49 = vld [vmem:[#allocation54_spill] sm:$0xff]  ;;  %v4539_v7 = vld [vmem:[#allocation15_spill] sm:$0xff] }
 0x18e   : > { %v1247_v39 = vadd.f32 1.4214138, %v1215_v35  ;;  %vm994_vm12 = vcmp.eq.f32.partialorder %v993_v45, 8.507059e+37  ;;  %v1566_v3 = vmul.f32 %v4528_v48, %v1406_v38  ;;  %v1217_v12 = vmul.f32 %v1185_v17, %v3874_v6 }
 0x18f   : > { %v996_v46 = vor.u32 1.1754944e-38, %v995_v22  ;;  %v1154_v11 = vmul.f32 1.0614054, %v3884_v10  ;;  %v1376_v33 = vadd.f32 0.2548296, %v1344_v56  ;;  %v973_v30 = vadd.f32 %v4530_v41, %v4529_v28 }
 0x190   : > { %v1279_v37 = vmul.f32 %v1247_v39, %v3857_v52  ;;  %vm975_vm13 = vweird.f32 %v4530_v41  ;;  %vm1004_vm14 = vweird.f32 %v4531_v21  ;;  %v1598_v0 = vsub.f32 1.0, %v1566_v3 }
 0x191   : > { %v1249_v47 = vadd.f32 1.4214138, %v1217_v12  ;;  %v3905_v44 = vsel %vm994_vm12, %v996_v46, %v992_v4  ;;  %v1186_v42 = vadd.f32 -1.4531521, %v1154_v11  ;;  %vm3909_vm15 = vmor %vm974_vm6, %vm975_vm13  ;;  %v1408_v60 = vmul.f32 %v1376_v33, %v3819_v59 }
 0x192   : > { %v1311_v8 = vadd.f32 -0.28449672, %v1279_v37  ;;  %v1156_v29 = vmul.f32 1.0614054, %v3905_v44  ;;  %v977_v15 = vsel %vm3909_vm15, %v4530_v41, %v973_v30  ;;  %v1630_v35 = vmul.f32 %v1598_v0, %v4534_v49  ;;  %v4536_v37 = vld [vmem:[#allocation47_spill] sm:$0xff]  ;;  %v4537_v0 = vld [vmem:[#allocation46_spill] sm:$0xff] }
 0x193   : > { %v1281_v45 = vmul.f32 %v1249_v47, %v3874_v6  ;;  %v1218_v38 = vmul.f32 %v1186_v42, %v3884_v10  ;;  %v978_v17 = vand.u32 2147483647, %v3211_v31  ;;  %v1568_v22 = vmul.f32 %v4535_v1, %v1408_v60  ;;  %v4538_v47 = vld [vmem:[#allocation16_spill] sm:$0xff]  ;;  %v4541_v1 = vld [vmem:[#allocation57_spill] sm:$0xff] }
 0x194   : > { %v1343_v56 = vmul.f32 %v1311_v8, %v3857_v52  ;;  %v1188_v59 = vadd.f32 -1.4531521, %v1156_v29  ;;  %v980_v39 = vand.u32 2147483648, %v3211_v31  ;;  %v1662_v4 = vadd.f32 1.0, %v1630_v35  ;;  %v4540_v31 = vld [vmem:[#allocation60_spill] sm:$0xff] }
 0x195   : > { %v1313_v48 = vadd.f32 -0.28449672, %v1281_v45  ;;  %v1250_v3 = vadd.f32 1.4214138, %v1218_v38  ;;  %vm979_vm1 = vcmp.eq.f32.partialorder %v978_v17, 8.507059e+37  ;;  %v1600_v12 = vsub.f32 1.0, %v1568_v22 }
 0x196   : > { %v1375_v46 = vadd.f32 0.2548296, %v1343_v56  ;;  %v1220_v11 = vmul.f32 %v1188_v59, %v3905_v44  ;;  %v981_v33 = vor.u32 1.1754944e-38, %v980_v39  ;;  %v1694_v28 = vmul.f32 %v1662_v4, %v4536_v37  ;;  %v4550_v59 = vld [vmem:[#allocation6_spill] sm:$0xff] }
 0x197   : > { %v1345_v41 = vmul.f32 %v1313_v48, %v3874_v6  ;;  %v1282_v30 = vmul.f32 %v1250_v3, %v3884_v10  ;;  %v1003_v42 = vadd.f32 %v4538_v47, %v4537_v0  ;;  %vm1019_vm2 = vweird.f32 %v4539_v7  ;;  %v4544_v48 = vld [vmem:[#allocation58_spill] sm:$0xff] }
 0x198   : > { %v1632_v60 = vmul.f32 %v1600_v12, %v4540_v31  ;;  %v1407_v8 = vmul.f32 %v1375_v46, %v3857_v52  ;;  %v1252_v29 = vadd.f32 1.4214138, %v1220_v11  ;;  %v3934_v49 = vsel %vm979_vm1, %v981_v33, %v977_v15  ;;  %v4545_v33 = vld [vmem:[#allocation14_spill] sm:$0xff] }
 0x199   : > { %v1377_v35 = vadd.f32 0.2548296, %v1345_v41  ;;  %v1314_v45 = vadd.f32 -0.28449672, %v1282_v30  ;;  %vm1005_vm3 = vweird.f32 %v4538_v47  ;;  %v1008_v38 = vand.u32 2147483647, %v4531_v21 }
 0x19a   : > { %v1664_v17 = vadd.f32 1.0, %v1632_v60  ;;  %v1567_v22 = vmul.f32 %v4541_v1, %v1407_v8  ;;  %v1284_v56 = vmul.f32 %v1252_v29, %v3905_v44  ;;  %vm3942_vm4 = vmor %vm1004_vm14, %vm1005_vm3  ;;  %v1010_v52 = vand.u32 2147483648, %v4531_v21  ;;  %v4547_v30 = vld [vmem:[#allocation39_spill] sm:$0xff] }
 0x19b   : > { %v1409_v15 = vmul.f32 %v1377_v35, %v3874_v6  ;;  %v1346_v39 = vmul.f32 %v1314_v45, %v3884_v10  ;;  %v1007_v4 = vsel %vm3942_vm4, %v4538_v47, %v1003_v42  ;;  %vm1009_vm5 = vcmp.eq.f32.partialorder %v1008_v38, 8.507059e+37  ;;  %v4546_v6 = vld [vmem:[#allocation44_spill] sm:$0xff]  ;;  %v4548_v60 = vld [vmem:[#allocation55_spill] sm:$0xff] }
 0x19c   : > { %vm1049_vm6 = vweird.f32 %v3563_v34  ;;  %v1696_v3 = vmul.f32 %v1664_v17, %v4544_v48  ;;  %v1599_v12 = vsub.f32 1.0, %v1567_v22  ;;  %v1316_v46 = vadd.f32 -0.28449672, %v1284_v56  ;;  %v4554_v48 = vld [vmem:[#allocation52_spill] sm:$0xff] }
 0x19d   : > { %v1011_v11 = vor.u32 1.1754944e-38, %v1010_v52  ;;  %v1569_v37 = vmul.f32 %v4545_v33, %v1409_v15  ;;  %v1378_v41 = vadd.f32 0.2548296, %v1346_v39  ;;  %v1155_v21 = vmul.f32 1.0614054, %v3934_v49 }
 0x19e   : > { %v1018_v0 = vadd.f32 %v4547_v30, %v4546_v6  ;;  %v1718_v31 = vpack.c.bf16 %v1696_v3, %v1694_v28  ;;  %v1631_v8 = vmul.f32 %v1599_v12, %v4548_v60  ;;  %v1348_v47 = vmul.f32 %v1316_v46, %v3905_v44  ;;  %v4549_v28 = vld [vmem:[#allocation9_spill] sm:$0xff]  ;;  %v4557_v6 = vld [vmem:[#allocation22_spill] sm:$0xff] }
 0x19f   : > { %v3960_v42 = vsel %vm1009_vm5, %v1011_v11, %v1007_v4  ;;  %v1601_v29 = vsub.f32 1.0, %v1569_v37  ;;  %v1410_v35 = vmul.f32 %v1378_v41, %v3884_v10  ;;  %v1187_v38 = vadd.f32 -1.4531521, %v1155_v21  ;;  %v4553_v4 = vld [vmem:[#allocation5_spill] sm:$0xff]  ;;  %v4565_v10 = vld [vmem:[#allocation2_spill] sm:$0xff] }
 0x1a0   : > { %v1157_v45 = vmul.f32 1.0614054, %v3960_v42  ;;  %1886 = vmatmul.bf16.gmra.mxu2 %v1718_v31  ;;  %v1663_v17 = vadd.f32 1.0, %v1631_v8  ;;  %v1380_v1 = vadd.f32 0.2548296, %v1348_v47  ;;  %vm1020_vm7 = vweird.f32 %v4547_v30  ;;  %v4558_v8 = vld [vmem:[#allocation59_spill] sm:$0xff] }
 0x1a1   : > { %v1023_v22 = vand.u32 2147483647, %v4539_v7  ;;  %v1633_v56 = vmul.f32 %v1601_v29, %v4549_v28  ;;  %v1570_v52 = vmul.f32 %v4550_v59, %v1410_v35  ;;  %v1219_v39 = vmul.f32 %v1187_v38, %v3934_v49  ;;  %vm3971_vm8 = vmor %vm1019_vm2, %vm1020_vm7  ;;  %v4562_v59 = vld [vmem:[#allocation27_spill] sm:$0xff] }
 0x1a2   : > { %v1189_v15 = vadd.f32 -1.4531521, %v1157_v45  ;;  %vm1034_vm9 = vweird.f32 %v4553_v4  ;;  %v1695_v3 = vmul.f32 %v1663_v17, %v4554_v48  ;;  %v1412_v12 = vmul.f32 %v1380_v1, %v3905_v44 }
 0x1a3   : > { %v1022_v46 = vsel %vm3971_vm8, %v4547_v30, %v1018_v0  ;;  %vm3981_vm10 = vcmp.eq.f32.partialorder %v1023_v22, 8.507059e+37  ;;  %v1665_v33 = vadd.f32 1.0, %v1633_v56  ;;  %v1602_v37 = vsub.f32 1.0, %v1570_v52  ;;  %v4559_v0 = vld [vmem:[#allocation3_spill] sm:$0xff] }
 0x1a4   : > { %v1221_v41 = vmul.f32 %v1189_v15, %v3960_v42  ;;  %v1251_v21 = vadd.f32 1.4214138, %v1219_v39  ;;  %v1572_v31 = vmul.f32 %v4557_v6, %v1412_v12  ;;  %v1025_v60 = vand.u32 2147483648, %v4539_v7 }
 0x1a5   : > { %v1048_v44 = vadd.f32 %v3616_v5, %v3690_v54  ;;  %vm1050_vm11 = vweird.f32 %v3616_v5  ;;  %v1697_v30 = vmul.f32 %v1665_v33, %v4558_v8  ;;  %v1634_v47 = vmul.f32 %v1602_v37, %v4559_v0 }
 0x1a6   : > { %v1253_v29 = vadd.f32 1.4214138, %v1221_v41  ;;  %v1283_v35 = vmul.f32 %v1251_v21, %v3934_v49  ;;  %vm3996_vm12 = vmor %vm1049_vm6, %vm1050_vm11  ;;  %v1604_v38 = vsub.f32 1.0, %v1572_v31  ;;  %v1026_v7 = vor.u32 1.1754944e-38, %v1025_v60  ;;  %v4568_v60 = vld [vmem:[#allocation17_spill] sm:$0xff] }
 0x1a7   : > { %v1052_v54 = vsel %vm3996_vm12, %v3616_v5, %v1048_v44  ;;  %v1053_v17 = vand.u32 2147483647, %v3563_v34  ;;  %v1719_v1 = vpack.c.bf16 %v1697_v30, %v1695_v3  ;;  %v1666_v22 = vadd.f32 1.0, %v1634_v47 }
 0x1a8   : > { %v1285_v28 = vmul.f32 %v1253_v29, %v3960_v42  ;;  %v1315_v56 = vadd.f32 -0.28449672, %v1283_v35  ;;  %vm1064_vm13 = vweird.f32 %v3594_v25  ;;  %v1636_v52 = vmul.f32 %v1604_v38, %v4562_v59 }
 0x1a9   : > { %v4009_v15 = vsel %vm3981_vm10, %v1026_v7, %v1022_v46  ;;  %vm4011_vm14 = vcmp.eq.f32.partialorder %v1053_v17, 8.507059e+37  ;;  %v1055_v5 = vand.u32 2147483648, %v3563_v34  ;;  %1935 = vmatmul.bf16.gmra.mxu3 %v1719_v1  ;;  %v1698_v48 = vmul.f32 %v1666_v22, %v4565_v10  ;;  %v4569_v17 = vld [vmem:[#allocation12_spill] sm:$0xff] }
 0x1aa   : > { %v1317_v3 = vadd.f32 -0.28449672, %v1285_v28  ;;  %v1347_v12 = vmul.f32 %v1315_v56, %v3934_v49  ;;  %v1158_v33 = vmul.f32 1.0614054, %v4009_v15  ;;  %v1668_v37 = vadd.f32 1.0, %v1636_v52  ;;  %v4570_v56 = vld [vmem:[#allocation32_spill] sm:$0xff] }
 0x1ab   : > { %v1056_v41 = vor.u32 1.1754944e-38, %v1055_v5  ;;  %v1033_v46 = vadd.f32 %v3507_v19, %v3575_v2  ;;  %vm1035_vm15 = vweird.f32 %v3507_v19  ;;  %v1038_v31 = vand.u32 2147483647, %v4553_v4 }
 0x1ac   : > { %v1349_v11 = vmul.f32 %v1317_v3, %v3960_v42  ;;  %v1379_v21 = vadd.f32 0.2548296, %v1347_v12  ;;  %v1190_v6 = vadd.f32 -1.4531521, %v1158_v33  ;;  %vm4025_vm1 = vmor %vm1034_vm9, %vm1035_vm15  ;;  %vm1079_vm2 = vweird.f32 %v3619_v53  ;;  %v4571_v3 = vld [vmem:[#allocation63_spill] sm:$0xff] }
 0x1ad   : > { %v1700_v44 = vmul.f32 %v1668_v37, %v4568_v60  ;;  %v4034_v2 = vsel %vm4011_vm14, %v1056_v41, %v1052_v54  ;;  %v1037_v8 = vsel %vm4025_vm1, %v3507_v19, %v1033_v46  ;;  %v1040_v30 = vand.u32 2147483648, %v4553_v4 }
 0x1ae   : > { %v1381_v0 = vadd.f32 0.2548296, %v1349_v11  ;;  %v1411_v47 = vmul.f32 %v1379_v21, %v3934_v49  ;;  %v1160_v29 = vmul.f32 1.0614054, %v4034_v2  ;;  %v1222_v35 = vmul.f32 %v1190_v6, %v4009_v15  ;;  %v4572_v11 = vld [vmem:[#allocation8_spill] sm:$0xff] }
 0x1af   : > { %v1720_v45 = vpack.c.bf16 %v1700_v44, %v1698_v48  ;;  %vm1039_vm3 = vcmp.eq.f32.partialorder %v1038_v31, 8.507059e+37  ;;  %v1041_v38 = vor.u32 1.1754944e-38, %v1040_v30  ;;  %v1063_v7 = vadd.f32 %v3648_v58, %v3712_v32 }
 0x1b0   : > { %v1413_v54 = vmul.f32 %v1381_v0, %v3960_v42  ;;  %v1571_v1 = vmul.f32 %v4569_v17, %v1411_v47  ;;  %v1192_v19 = vadd.f32 -1.4531521, %v1160_v29  ;;  %v1254_v22 = vadd.f32 1.4214138, %v1222_v35  ;;  %v4575_v0 = vld [vmem:[#allocation10_spill] sm:$0xff] }
 0x1b1   : > { %1891 = vmatmul.bf16.gmra.mxu2 %v1720_v45  ;;  %v4047_v4 = vsel %vm1039_vm3, %v1041_v38, %v1037_v8  ;;  %vm1065_vm4 = vweird.f32 %v3648_v58  ;;  %v1068_v49 = vand.u32 2147483647, %v3594_v25  ;;  %v1070_v28 = vand.u32 2147483648, %v3594_v25  ;;  %v4578_v17 = vld [vmem:[#allocation18_spill] sm:$0xff] }
 0x1b2   : > { %v1573_v59 = vmul.f32 %v4570_v56, %v1413_v54  ;;  %v1603_v52 = vsub.f32 1.0, %v1571_v1  ;;  %v1224_v32 = vmul.f32 %v1192_v19, %v4034_v2  ;;  %v1286_v42 = vmul.f32 %v1254_v22, %v4009_v15  ;;  %vm1066_vm5 = vmor %vm1064_vm13, %vm1065_vm4 }
 0x1b3   : > { %vm1109_vm6 = vweird.f32 %v3729_v24  ;;  %v1067_v39 = vsel %vm1066_vm5, %v3648_v58, %v1063_v7  ;;  %vm1069_vm7 = vcmp.eq.f32.partialorder %v1068_v49, 8.507059e+37  ;;  %v1071_v5 = vor.u32 1.1754944e-38, %v1070_v28 }
 0x1b4   : > { %v1159_v10 = vmul.f32 1.0614054, %v4047_v4  ;;  %v1605_v48 = vsub.f32 1.0, %v1573_v59  ;;  %v1635_v12 = vmul.f32 %v1603_v52, %v4571_v3  ;;  %v1256_v33 = vadd.f32 1.4214138, %v1224_v32  ;;  %v4579_v52 = vld [vmem:[#allocation33_spill] sm:$0xff] }
 0x1b5   : > { %v1318_v37 = vadd.f32 -0.28449672, %v1286_v42  ;;  %v4061_v41 = vsel %vm1069_vm7, %v1071_v5, %v1067_v39  ;;  %v1078_v25 = vadd.f32 %v3674_v9, %v3752_v50  ;;  %vm1080_vm8 = vweird.f32 %v3674_v9 }
 0x1b6   : > { %v1191_v46 = vadd.f32 -1.4531521, %v1159_v10  ;;  %v1637_v21 = vmul.f32 %v1605_v48, %v4572_v11  ;;  %v1667_v58 = vadd.f32 1.0, %v1635_v12  ;;  %v1288_v6 = vmul.f32 %v1256_v33, %v4034_v2  ;;  %vm4071_vm9 = vmor %vm1079_vm2, %vm1080_vm8 }
 0x1b7   : > { %v1350_v34 = vmul.f32 %v1318_v37, %v4009_v15  ;;  %v1161_v60 = vmul.f32 1.0614054, %v4061_v41  ;;  %v1082_v50 = vsel %vm4071_vm9, %v3674_v9, %v1078_v25  ;;  %v1083_v8 = vand.u32 2147483647, %v3619_v53 }
 0x1b8   : > { %v1223_v44 = vmul.f32 %v1191_v46, %v4047_v4  ;;  %v1669_v30 = vadd.f32 1.0, %v1637_v21  ;;  %v1699_v47 = vmul.f32 %v1667_v58, %v4575_v0  ;;  %v1320_v29 = vadd.f32 -0.28449672, %v1288_v6  ;;  %v4584_v21 = vld [vmem:[#allocation11_spill] sm:$0xff] }
 0x1b9   : > { %v1382_v35 = vadd.f32 0.2548296, %v1350_v34  ;;  %v1193_v45 = vadd.f32 -1.4531521, %v1161_v60  ;;  %vm4082_vm10 = vcmp.eq.f32.partialorder %v1083_v8, 8.507059e+37  ;;  %v1085_v54 = vand.u32 2147483648, %v3619_v53 }
 0x1ba   : > { %v1255_v38 = vadd.f32 1.4214138, %v1223_v44  ;;  %vm1094_vm11 = vweird.f32 %v3621_v20  ;;  %v1701_v1 = vmul.f32 %v1669_v30, %v4578_v17  ;;  %v1352_v9 = vmul.f32 %v1320_v29, %v4034_v2 }
 0x1bb   : > { %v1414_v19 = vmul.f32 %v1382_v35, %v4009_v15  ;;  %v1108_v22 = vadd.f32 %v3769_v51, %v3805_v14  ;;  %v1225_v49 = vmul.f32 %v1193_v45, %v4061_v41  ;;  %v1086_v56 = vor.u32 1.1754944e-38, %v1085_v54 }
 0x1bc   : > { %v1287_v28 = vmul.f32 %v1255_v38, %v4047_v4  ;;  %vm1110_vm12 = vweird.f32 %v3769_v51  ;;  %v1721_v59 = vpack.c.bf16 %v1701_v1, %v1699_v47  ;;  %v1384_v53 = vadd.f32 0.2548296, %v1352_v9 }
 0x1bd   : > { %v1574_v32 = vmul.f32 %v4579_v52, %v1414_v19  ;;  %vm4099_vm13 = vmor %vm1109_vm6, %vm1110_vm12  ;;  %v1113_v15 = vand.u32 2147483647, %v3729_v24  ;;  %v1257_v14 = vadd.f32 1.4214138, %v1225_v49  ;;  %v4106_v5 = vsel %vm4082_vm10, %v1086_v56, %v1082_v50  ;;  %v4587_v19 = vld [vmem:[#allocation7_spill] sm:$0xff] }
 0x1be   : > { %v1319_v39 = vadd.f32 -0.28449672, %v1287_v28  ;;  %v1112_v10 = vsel %vm4099_vm13, %v3769_v51, %v1108_v22  ;;  %1940 = vmatmul.bf16.gmra.mxu3 %v1721_v59  ;;  %v1416_v48 = vmul.f32 %v1384_v53, %v4034_v2  ;;  %v1115_v33 = vand.u32 2147483648, %v3729_v24  ;;  %v4588_v28 = vld [vmem:[#allocation19_spill] sm:$0xff]  ;;  %v4589_v59 = vld [vmem:[#allocation40_spill] sm:$0xff] }
 0x1bf   : > { %v1606_v3 = vsub.f32 1.0, %v1574_v32  ;;  %vm4112_vm14 = vcmp.eq.f32.partialorder %v1113_v15, 8.507059e+37  ;;  %v1289_v37 = vmul.f32 %v1257_v14, %v4061_v41  ;;  %v1162_v25 = vmul.f32 1.0614054, %v4106_v5 }
 0x1c0   : > { %v1351_v46 = vmul.f32 %v1319_v39, %v4047_v4  ;;  %v1093_v11 = vadd.f32 %v3687_v40, %v3759_v63  ;;  %v1576_v51 = vmul.f32 %v3668_v36, %v1416_v48  ;;  %v1116_v58 = vor.u32 1.1754944e-38, %v1115_v33 }
 0x1c1   : > { %v1638_v2 = vmul.f32 %v1606_v3, %v4584_v21  ;;  %vm1095_vm15 = vweird.f32 %v3687_v40  ;;  %vm1124_vm1 = vweird.f32 %v3740_v26  ;;  %v1321_v6 = vadd.f32 -0.28449672, %v1289_v37 }
 0x1c2   : > { %v1383_v24 = vadd.f32 0.2548296, %v1351_v46  ;;  %v1194_v34 = vadd.f32 -1.4531521, %v1162_v25  ;;  %v1608_v31 = vsub.f32 1.0, %v1576_v51  ;;  %v4128_v44 = vsel %vm4112_vm14, %v1116_v58, %v1112_v10  ;;  %vm4138_vm2 = vmor %vm1094_vm11, %vm1095_vm15  ;;  %v1867_v25 = vpop.f32.mrf.mxu2 }
 0x1c3   : > { %v1670_v60 = vadd.f32 1.0, %v1638_v2  ;;  %v1123_v63 = vadd.f32 %v3799_v27, %v3836_v18  ;;  %v1353_v36 = vmul.f32 %v1321_v6, %v4061_v41  ;;  %v1164_v8 = vmul.f32 1.0614054, %v4128_v44  ;;  %v4181_v46 = vld [vmem:[%s4278_s4] ss:$0 sm:$0xff] }
 0x1c4   : > { %v1415_v50 = vmul.f32 %v1383_v24, %v4047_v4  ;;  %v1226_v30 = vmul.f32 %v1194_v34, %v4106_v5  ;;  %v1640_v47 = vmul.f32 %v1608_v31, %v3591_v61  ;;  %v1097_v18 = vsel %vm4138_vm2, %v3687_v40, %v1093_v11  ;;  %v1916_v11 = vpop.f32.mrf.mxu3  ;;  %v4592_v34 = vld [vmem:[#allocation25_spill] sm:$0xff] }
 0x1c5   : > { %v1098_v29 = vand.u32 2147483647, %v3621_v20  ;;  %v1100_v4 = vand.u32 2147483648, %v3621_v20  ;;  %v1385_v35 = vadd.f32 0.2548296, %v1353_v36  ;;  %vm1125_vm4 = vweird.f32 %v3799_v27  ;;  %v4593_v36 = vld [vmem:[#allocation36_spill] sm:$0xff] }
 0x1c6   : > { %v1575_v45 = vmul.f32 %v3572_v23, %v1415_v50  ;;  %v1196_v38 = vadd.f32 -1.4531521, %v1164_v8  ;;  %v1258_v7 = vadd.f32 1.4214138, %v1226_v30  ;;  %v1672_v54 = vadd.f32 1.0, %v1640_v47  ;;  %vm4166_vm6 = vmor %vm1124_vm1, %vm1125_vm4  ;;  %v4594_v30 = vld [vmem:[#allocation30_spill] sm:$0xff] }
 0x1c7   : > { %vm1099_vm3 = vcmp.eq.f32.partialorder %v1098_v29, 8.507059e+37  ;;  %v1101_v17 = vor.u32 1.1754944e-38, %v1100_v4  ;;  %v1417_v61 = vmul.f32 %v1385_v35, %v4061_v41  ;;  %v1702_v22 = vmul.f32 %v1670_v60, %v4587_v19 }
 0x1c8   : > { %v1607_v1 = vsub.f32 1.0, %v1575_v45  ;;  %v1228_v9 = vmul.f32 %v1196_v38, %v4128_v44  ;;  %v1290_v40 = vmul.f32 %v1258_v7, %v4106_v5  ;;  %v1704_v20 = vmul.f32 %v1672_v54, %v3568_v16 }
 0x1c9   : > { %v4155_v49 = vsel %vm1099_vm3, %v1101_v17, %v1097_v18  ;;  %v1128_v23 = vand.u32 2147483647, %v3740_v26  ;;  %vm522_vm5 = vcmp.ge.f32.partialorder %v4588_v28, 0.0  ;;  %v1577_v56 = vmul.f32 %v3714_v13, %v1417_v61  ;;  %v4596_v61 = vld [vmem:[#allocation48_spill] sm:$0xff] }
 0x1ca   : > { %v1639_v53 = vmul.f32 %v1607_v1, %v4589_v59  ;;  %v1260_v41 = vadd.f32 1.4214138, %v1228_v9  ;;  %v1322_v52 = vadd.f32 -0.28449672, %v1290_v40  ;;  %v1546_v32 = vmul.f32 1.442695, %v3762_v62  ;;  %v1869_v40 = vpop.f32.mrf.mxu2 }
 0x1cb   : > { %v1722_v42 = vpack.c.bf16 %v1704_v20, %v1702_v22  ;;  %v1130_v15 = vand.u32 2147483648, %v3740_v26  ;;  %v1163_v14 = vmul.f32 1.0614054, %v4155_v49  ;;  %v1609_v13 = vsub.f32 1.0, %v1577_v56 }
 0x1cc   : > { %v1292_v39 = vmul.f32 %v1260_v41, %v4128_v44  ;;  %v1354_v10 = vmul.f32 %v1322_v52, %v4106_v5  ;;  %v1127_v62 = vsel %vm4166_vm6, %v3799_v27, %v1123_v63  ;;  %v1671_v48 = vadd.f32 1.0, %v1639_v53 }
 0x1cd   : > { %1896 = vmatmul.bf16.gmra.mxu2 %v1722_v42  ;;  %vm1129_vm7 = vcmp.eq.f32.partialorder %v1128_v23, 8.507059e+37  ;;  %v1131_v3 = vor.u32 1.1754944e-38, %v1130_v15  ;;  %v1195_v12 = vadd.f32 -1.4531521, %v1163_v14  ;;  %v1641_v33 = vmul.f32 %v1609_v13, %v3634_v55  ;;  %v4597_v15 = vld [vmem:[#allocation31_spill] sm:$0xff]  ;;  %v4598_v13 = vld [vmem:[#allocation13_spill] sm:$0xff] }
 0x1ce   : > { %v1324_v37 = vadd.f32 -0.28449672, %v1292_v39  ;;  %v1386_v26 = vadd.f32 0.2548296, %v1354_v10  ;;  %2307 = vpow2.f32 %v1546_v32  ;;  %v1453_v27 = vsub.f32 0.0, %v3722_v43 }
 0x1cf   : > { %v4184_v51 = vsel %vm1129_vm7, %v1131_v3, %v1127_v62  ;;  %v1227_v21 = vmul.f32 %v1195_v12, %v4155_v49  ;;  %v1673_v2 = vadd.f32 1.0, %v1641_v33  ;;  %v1544_v24 = vmul.f32 1.442695, %v3737_v57  ;;  %v4599_v3 = vld [vmem:[#allocation43_spill] sm:$0xff] }
 0x1d0   : > { %v1356_v55 = vmul.f32 %v1324_v37, %v4128_v44  ;;  %v1418_v58 = vmul.f32 %v1386_v26, %v4106_v5  ;;  %v1165_v6 = vmul.f32 1.0614054, %v4184_v51  ;;  %v1703_v31 = vmul.f32 %v1671_v48, %v4592_v34 }
 0x1d1   : > { %v1259_v60 = vadd.f32 1.4214138, %v1227_v21  ;;  %v1868_v63 = vadd.f32 %v4181_v46, %v1867_v25  ;;  %v1705_v50 = vmul.f32 %v1673_v2, %v4593_v36  ;;  %v1485_v57 = vmul.f32 %v1453_v27, %v3722_v43 }
 0x1d2   : > { %v1388_v8 = vadd.f32 0.2548296, %v1356_v55  ;;  %v1578_v0 = vmul.f32 %v4594_v30, %v1418_v58  ;;  %v1197_v47 = vadd.f32 -1.4531521, %v1165_v6  ;;  %v4595_v7 = vmov -1.0   ;;  %v1872_v26 = vpop.f32.mrf.mxu2  ;;  %v4600_v6 = vld [vmem:[#allocation21_spill] sm:$0xff] }
 0x1d3   : > { %v1291_v5 = vmul.f32 %v1259_v60, %v4155_v49  ;;  %v1917_v18 = vadd.f32 %v1916_v11, %v1868_v63  ;;  %v1723_v29 = vpack.c.bf16 %v1705_v50, %v1703_v31  ;;  %v554_v54 = vsel %vm522_vm5, 1.0, %v4595_v7  ;;  %v4601_v30 = vld [vmem:[#allocation28_spill] sm:$0xff] }
 0x1d4   : > { %v1420_v4 = vmul.f32 %v1388_v8, %v4128_v44  ;;  %v1610_v35 = vsub.f32 1.0, %v1578_v0  ;;  %v1229_v45 = vmul.f32 %v1197_v47, %v4184_v51  ;;  %v2308_v38 = vpop.eup %2307  ;;  %2309 = vpow2.f32 %v1544_v24  ;;  %v1918_v44 = vpop.f32.mrf.mxu3  ;;  %v4602_v47 = vld [vmem:[#allocation24_spill] sm:$0xff] }
 0x1d5   : > { %v1323_v17 = vadd.f32 -0.28449672, %v1291_v5  ;;  %1956 = vst.msk [vmem:[%s4200_s27] sm:$0xff] %vm307_vm0, %v1917_v18  ;;  %vm524_vm8 = vcmp.ge.f32.partialorder %v4596_v61, 0.0  ;;  %1945 = vmatmul.bf16.gmra.mxu3 %v1723_v29  ;;  %v1548_v19 = vmul.f32 1.442695, %v1485_v57  ;;  %v1870_v20 = vadd.f32 %v4181_v46, %v1869_v40 }
 0x1d6   : > { %v1580_v43 = vmul.f32 %v2308_v38, %v1420_v4  ;;  %v1642_v1 = vmul.f32 %v1610_v35, %v554_v54  ;;  %v1261_v9 = vadd.f32 1.4214138, %v1229_v45  ;;  %v556_v56 = vsel %vm524_vm8, 1.0, %v4595_v7 }
 0x1d7   : > { %v1355_v22 = vmul.f32 %v1323_v17, %v4155_v49  ;;  %v1919_v53 = vadd.f32 %v1918_v44, %v1870_v20  ;;  %2311 = vpow2.f32 %v1548_v19  ;;  %v458_v14 = vmul.f32 0.5, %v4597_v15 }
 0x1d8   : > { %v1612_v23 = vsub.f32 1.0, %v1580_v43  ;;  %v1293_v28 = vmul.f32 %v1261_v9, %v4184_v51  ;;  %v1674_v52 = vadd.f32 1.0, %v1642_v1  ;;  %v460_v39 = vmul.f32 0.5, %v4598_v13 }
 0x1d9   : > { %v1387_v59 = vadd.f32 0.2548296, %v1355_v22  ;;  %1957 = vst.msk [vmem:[%s4200_s27 + $0x8] sm:$0xff] %vm307_vm0, %v1919_v53  ;;  %vm523_vm9 = vcmp.ge.f32.partialorder %v4599_v3, 0.0  ;;  %vm525_vm10 = vcmp.ge.f32.partialorder %v4600_v6, 0.0  ;;  %v459_v0 = vmul.f32 0.5, %v4601_v30 }
 0x1da   : > { %v1644_v41 = vmul.f32 %v1612_v23, %v556_v56  ;;  %v1325_v32 = vadd.f32 -0.28449672, %v1293_v28  ;;  %v2310_v42 = vpop.eup %2309  ;;  %v1706_v12 = vmul.f32 %v1674_v52, %v458_v14  ;;  %v555_v55 = vsel %vm523_vm9, 1.0, %v4595_v7  ;;  %v1874_v50 = vpop.f32.mrf.mxu2 }
 0x1db   : > { %v1419_v16 = vmul.f32 %v1387_v59, %v4155_v49  ;;  %v1873_v49 = vadd.f32 %v4181_v46, %v1872_v26  ;;  %v557_v60 = vsel %vm525_vm10, 1.0, %v4595_v7  ;;  %v1875_v8 = vadd.f32 %v4181_v46, %v1874_v50 }
 0x1dc   : > { %v1676_v10 = vadd.f32 1.0, %v1644_v41  ;;  %v1357_v62 = vmul.f32 %v1325_v32, %v4184_v51  ;;  %v1921_v25 = vpop.f32.mrf.mxu3  ;;  %v461_v57 = vmul.f32 0.5, %v4602_v47 }
 0x1dd   : > { %v1579_v48 = vmul.f32 %v2310_v42, %v1419_v16  ;;  %v2312_v2 = vpop.eup %2311  ;;  %v1922_v58 = vadd.f32 %v1921_v25, %v1873_v49 }
 0x1de   : > { %v1708_v33 = vmul.f32 %v1676_v10, %v460_v39  ;;  %v1389_v37 = vadd.f32 0.2548296, %v1357_v62 }
 0x1df   : > { %v1611_v11 = vsub.f32 1.0, %v1579_v48  ;;  %1958 = vst.msk [vmem:[%s4200_s27 + $0x10] sm:$0xff] %vm307_vm0, %v1922_v58 }
 0x1e0   : > { %v1724_v27 = vpack.c.bf16 %v1708_v33, %v1706_v12  ;;  %v1421_v21 = vmul.f32 %v1389_v37, %v4184_v51 }
 0x1e1   : > { %v1643_v34 = vmul.f32 %v1611_v11, %v555_v55 }
 0x1e2   : > { %1901 = vmatmul.bf16.gmra.mxu2 %v1724_v27  ;;  %v1581_v24 = vmul.f32 %v2312_v2, %v1421_v21  ;;  %v1877_v45 = vpop.f32.mrf.mxu2 }
 0x1e3   : > { %v1675_v36 = vadd.f32 1.0, %v1643_v34  ;;  %v1878_v7 = vadd.f32 %v4181_v46, %v1877_v45 }
 0x1e4   : > { %v1613_v31 = vsub.f32 1.0, %v1581_v24  ;;  %v1923_v51 = vpop.f32.mrf.mxu3 }
 0x1e5   : > { %v1924_v18 = vadd.f32 %v1923_v51, %v1875_v8  ;;  %v1707_v29 = vmul.f32 %v1675_v36, %v459_v0 }
 0x1e6   : > { %v1645_v63 = vmul.f32 %v1613_v31, %v557_v60 }
 0x1e7   : > { %1959 = vst.msk [vmem:[%s4200_s27 + $0x18] sm:$0xff] %vm307_vm0, %v1924_v18 }
 0x1e8   : > { %v1677_v5 = vadd.f32 1.0, %v1645_v63 }
 0x1ea   : > { %v1709_v4 = vmul.f32 %v1677_v5, %v461_v57  ;;  %v1879_v17 = vpop.f32.mrf.mxu2 }
 0x1eb   : > { %v1880_v61 = vadd.f32 %v4181_v46, %v1879_v17 }
 0x1ec   : > { %v1725_v35 = vpack.c.bf16 %v1709_v4, %v1707_v29  ;;  %v1926_v38 = vpop.f32.mrf.mxu3 }
 0x1ed   : > { %v1927_v54 = vadd.f32 %v1926_v38, %v1878_v7 }
 0x1ee   : > { %1950 = vmatmul.bf16.gmra.mxu3 %v1725_v35 }
 0x1ef   : > { %1960 = vst.msk [vmem:[%s4200_s27 + $0x20] sm:$0xff] %vm307_vm0, %v1927_v54 }
 0x1f4   : > { %v1928_v43 = vpop.f32.mrf.mxu3 }
 0x1f5   : > { %v1929_v1 = vadd.f32 %v1928_v43, %v1880_v61 }
 0x1f7   : > { %1961 = vst.msk [vmem:[%s4200_s27 + $0x28] sm:$0xff] %vm307_vm0, %v1929_v1 }
 0x201   : > { %v1882_v9 = vpop.f32.mrf.mxu2 }
 0x202   : > { %v1883_v40 = vadd.f32 %v4181_v46, %v1882_v9 }
 0x209   : > { %v1884_v22 = vpop.f32.mrf.mxu2 }
 0x20a   : > { %v1885_v20 = vadd.f32 %v4181_v46, %v1884_v22 }
 0x20b   : > { %v1931_v44 = vpop.f32.mrf.mxu3 }
 0x20c   : > { %v1932_v19 = vadd.f32 %v1931_v44, %v1883_v40 }
 0x20e   : > { %1962 = vst.msk [vmem:[%s4200_s27 + $0x30] sm:$0xff] %vm307_vm0, %v1932_v19 }
 0x213   : > { %v1933_v23 = vpop.f32.mrf.mxu3 }
 0x214   : > { %v1934_v28 = vadd.f32 %v1933_v23, %v1885_v20 }
 0x216   : > { %1963 = vst.msk [vmem:[%s4200_s27 + $0x38] sm:$0xff] %vm307_vm0, %v1934_v28 }
 0x223   : > { %v1887_v56 = vpop.f32.mrf.mxu2 }
 0x224   : > { %v1888_v59 = vadd.f32 %v4181_v46, %v1887_v56 }
 0x22b   : > { %v1889_v52 = vpop.f32.mrf.mxu2 }
 0x22c   : > { %v1936_v53 = vpop.f32.mrf.mxu3  ;;  %v1890_v32 = vadd.f32 %v4181_v46, %v1889_v52 }
 0x22d   : > { %v1937_v41 = vadd.f32 %v1936_v53, %v1888_v59 }
 0x22f   : > { %1964 = vst.msk [vmem:[%s4200_s27 + $0x40] sm:$0xff] %vm307_vm0, %v1937_v41 }
 0x234   : > { %v1938_v42 = vpop.f32.mrf.mxu3  ;;  %v1892_v15 = vpop.f32.mrf.mxu2 }
 0x235   : > { %v1939_v16 = vadd.f32 %v1938_v42, %v1890_v32  ;;  %v1893_v14 = vadd.f32 %v4181_v46, %v1892_v15 }
 0x237   : > { %1965 = vst.msk [vmem:[%s4200_s27 + $0x48] sm:$0xff] %vm307_vm0, %v1939_v16 }
 0x23c   : > { %v1894_v10 = vpop.f32.mrf.mxu2 }
 0x23d   : > { %v1895_v62 = vadd.f32 %v4181_v46, %v1894_v10 }
 0x241   : > { %v1941_v13 = vpop.f32.mrf.mxu3 }
 0x242   : > { %v1942_v39 = vadd.f32 %v1941_v13, %v1893_v14 }
 0x244   : > { %1966 = vst.msk [vmem:[%s4200_s27 + $0x50] sm:$0xff] %vm307_vm0, %v1942_v39 }
 0x249   : > { %v1943_v48 = vpop.f32.mrf.mxu3 }
 0x24a   : > { %v1944_v3 = vadd.f32 %v1943_v48, %v1895_v62 }
 0x24c   : > { %1967 = vst.msk [vmem:[%s4200_s27 + $0x58] sm:$0xff] %vm307_vm0, %v1944_v3 }
 0x250   : > { %v1897_v12 = vpop.f32.mrf.mxu2 }
 0x251   : > { %v1898_v33 = vadd.f32 %v4181_v46, %v1897_v12 }
 0x258   : > { %v1946_v37 = vpop.f32.mrf.mxu3  ;;  %v1899_v25 = vpop.f32.mrf.mxu2 }
 0x259   : > { %v1947_v26 = vadd.f32 %v1946_v37, %v1898_v33  ;;  %v1900_v11 = vadd.f32 %v4181_v46, %v1899_v25 }
 0x25b   : > { %1968 = vst.msk [vmem:[%s4200_s27 + $0x60] sm:$0xff] %vm307_vm0, %v1947_v26 }
 0x260   : > { %v1948_v49 = vpop.f32.mrf.mxu3 }
 0x261   : > { %v1949_v27 = vadd.f32 %v1948_v49, %v1900_v11 }
 0x263   : > { %1969 = vst.msk [vmem:[%s4200_s27 + $0x68] sm:$0xff] %vm307_vm0, %v1949_v27 }
 0x265   : > { %v1902_v21 = vpop.f32.mrf.mxu2 }
 0x266   : > { %v1903_v2 = vadd.f32 %v4181_v46, %v1902_v21 }
 0x26d   : > { %v1904_v6 = vpop.f32.mrf.mxu2 }
 0x26e   : > { %v1905_v24 = vadd.f32 %v4181_v46, %v1904_v6 }
 0x271   : > { %v1951_v55 = vpop.f32.mrf.mxu3 }
 0x272   : > { %v1952_v58 = vadd.f32 %v1951_v55, %v1903_v2 }
 0x274   : > { %1970 = vst.msk [vmem:[%s4200_s27 + $0x70] sm:$0xff] %vm307_vm0, %v1952_v58 }
 0x279   : > { %v1953_v34 = vpop.f32.mrf.mxu3 }
 0x27a   : > { %v1954_v31 = vadd.f32 %v1953_v34, %v1905_v24 }
 0x27c   : > { %1971 = vst.msk [vmem:[%s4200_s27 + $0x78] sm:$0xff] %vm307_vm0, %v1954_v31 }
 0x27d PF: > { %s15_s18 = sadd.s32 1, %s2319_s18  }
 0x27e   : > { %p12_p4 = scmp.ge.s32.totalorder %s15_s18, 4  }
 0x280   :  { %14 = sbr.rel (!%p12_p4) target bundleno = 1 (0x1), region = 70 }

</bundles_post_ra>
